<compile_context>
chip_gen: v7x
topology: tpu7x:2x2x1
jax: 0.10.0
libtpu: 0.0.40
codegen_flags: <defaults>
</compile_context>

<pallas_src>
import functools

import jax
import jax.numpy as jnp
from jax.experimental import pallas as pl
from jax.experimental.pallas import tpu as pltpu

K = 5  # 5x5 kernels for both convolutions


def _advice_kernel(x_ref, w1_ref, w2_ref, wl_ref, bl_ref, out_ref, *, ow1, n_win):
    # ---- conv1 + bias + ReLU: one MXU matmul -------------------------------
    # x_ref : (OH1*OW1, 26)  im2col'd input, last column == 1.0
    # w1_ref: (26, 5)        last row == b1
    h1 = jnp.maximum(
        jnp.dot(x_ref[...], w1_ref[...], preferred_element_type=jnp.float32), 0.0)

    # ---- conv2 + bias + ReLU: in-register im2col, one MXU matmul -----------
    # piece(ky,kx)[r, ic] = h1[r + ky*OW1 + kx, ic]; for valid rows
    # r = y2*OW1 + x2 (x2 < OW2, y2 < OH2) this is exactly the 5x5 window.
    pieces = []
    for ky in range(K):
        for kx in range(K):
            s = ky * ow1 + kx
            pieces.append(h1[s:s + n_win, :])            # (n_win, 5)
    pieces.append(jnp.ones((n_win, 1), jnp.float32))     # fused-bias column
    patch = jnp.concatenate(pieces, axis=-1)             # (n_win, 126)
    h2 = jnp.maximum(
        jnp.dot(patch, w2_ref[...], preferred_element_type=jnp.float32), 0.0)  # (n_win, 25)

    # ---- linear + sigmoid, all actions at once ------------------------------
    # wl_ref: (A, n_win, 25) with zero weight on invalid ("wrap") rows.
    prod = h2[None, :, :] * wl_ref[...]                          # (A, n_win, 25)
    s1 = jnp.sum(prod, axis=1)                                   # (A, 25)
    logits = jnp.sum(s1, axis=1, keepdims=True) + bl_ref[...]    # (A, 1)
    out_ref[...] = jax.nn.sigmoid(logits)                        # one sigmoid, one store


@functools.partial(jax.jit, static_argnames=("height", "width"))
def advice_model_2layer_forward(xb, params, *, height, width):
    """Forward pass matching AdviceModel2Layer.forward (num_frames == 1)."""
    w1, b1 = params["w1"], params["b1"]        # (5,1,5,5), (5,)
    w2, b2 = params["w2"], params["b2"]        # (25,5,5,5), (25,)
    wl, bl = params["wl"], params["bl"]        # (A, OH2*OW2*25), (A,)

    H, Wd = height, width
    A = wl.shape[0]
    OH1, OW1 = H - (K - 1), Wd - (K - 1)
    OH2, OW2 = OH1 - (K - 1), OW1 - (K - 1)
    n_win = (OH2 - 1) * OW1 + OW2              # rows of the flat conv2 window matrix

    # --- glue: im2col the input, append ones column (fuses b1) ---------------
    x2d = xb.reshape(H, Wd).astype(jnp.float32)
    cols = [x2d[ky:ky + OH1, kx:kx + OW1].reshape(-1)
            for ky in range(K) for kx in range(K)]
    x_patches = jnp.stack(cols, axis=-1)                                 # (OH1*OW1, 25)
    x_aug = jnp.concatenate(
        [x_patches, jnp.ones((OH1 * OW1, 1), jnp.float32)], axis=-1)     # (OH1*OW1, 26)

    # --- glue: weight reshapes with fused biases ------------------------------
    w1_mat = jnp.transpose(w1[:, 0], (1, 2, 0)).reshape(K * K, 5)        # [(ky,kx), oc]
    w1_aug = jnp.concatenate([w1_mat, b1.reshape(1, 5)], axis=0)         # (26, 5)
    w2_mat = jnp.transpose(w2, (2, 3, 1, 0)).reshape(K * K * 5, 25)      # [((ky,kx),ic), oc]
    w2_aug = jnp.concatenate([w2_mat, b2.reshape(1, 25)], axis=0)        # (126, 25)

    # --- glue: linear weights per flat window row, PyTorch flatten order -----
    # flat index = oc*OH2*OW2 + y2*OW2 + x2 ; invalid rows (x2 >= OW2) get 0.
    wl4 = wl.reshape(A, 25, OH2, OW2)
    wl_pos = jnp.transpose(wl4, (0, 2, 3, 1))                            # (A, OH2, OW2, 25)
    wl_pad = jnp.pad(wl_pos, ((0, 0), (0, 0), (0, OW1 - OW2), (0, 0)))   # (A, OH2, OW1, 25)
    wl_full = wl_pad.reshape(A, OH2 * OW1, 25)[:, :n_win, :]             # (A, n_win, 25)
    bl_col = bl.reshape(A, 1)

    kern = functools.partial(_advice_kernel, ow1=OW1, n_win=n_win)
    out = pl.pallas_call(
        kern,
        out_shape=jax.ShapeDtypeStruct((A, 1), jnp.float32),
        in_specs=[pl.BlockSpec(memory_space=pltpu.MemorySpace.VMEM)] * 5,
        out_specs=pl.BlockSpec(memory_space=pltpu.MemorySpace.VMEM),
    )(x_aug, w1_aug, w2_aug, wl_full, bl_col)
    return out.reshape(1, A)


if __name__ == "__main__":
    H = W = 16
    A = 4            # num_possible_actions
    NUM_FRAMES = 1   # module asserts num_frames == 1

    key = jax.random.PRNGKey(0)
    kx, k1, kb1, k2, kb2, kl, kbl = jax.random.split(key, 7)

    x = jax.random.normal(kx, (1, NUM_FRAMES, H, W), dtype=jnp.float32)

    def u(k, shape):
        return jax.random.uniform(k, shape, jnp.float32, -0.05, 0.05)

    params = {
        "w1": u(k1, (5, 1, 5, 5)),
        "b1": u(kb1, (5,)),
        "w2": u(k2, (25, 5, 5, 5)),
        "b2": u(kb2, (25,)),
        "wl": u(kl, (A, (H - 8) * (W - 8) * 25)),
        "bl": u(kbl, (A,)),
    }

    out = advice_model_2layer_forward(x, params, height=H, width=W)
    out = jax.block_until_ready(out)

    # pure-JAX reference for a sanity check
    def ref_forward(xb):
        v = xb.reshape(1, 1, H, W)
        v = jax.lax.conv_general_dilated(
            v, params["w1"], (1, 1), "VALID",
            dimension_numbers=("NCHW", "OIHW", "NCHW"))
        v = jax.nn.relu(v + params["b1"][None, :, None, None])
        v = jax.lax.conv_general_dilated(
            v, params["w2"], (1, 1), "VALID",
            dimension_numbers=("NCHW", "OIHW", "NCHW"))
        v = jax.nn.relu(v + params["b2"][None, :, None, None])
        v = v.reshape(1, -1)
        return jax.nn.sigmoid(v @ params["wl"].T + params["bl"][None, :])

    ref = ref_forward(x)
    assert out.shape == (1, A), out.shape
    assert jnp.allclose(out, ref, atol=1e-4, rtol=1e-4), (out, ref)
    print("KERNEL_OK")
</pallas_src>

<mosaic_0001>
module attributes {stable_mosaic.version = 11 : i64} {
  func.func @_advice_kernel(%arg0: memref<144x26xf32, #tpu.memory_space<vmem>>, %arg1: memref<26x5xf32, #tpu.memory_space<vmem>>, %arg2: memref<126x25xf32, #tpu.memory_space<vmem>>, %arg3: memref<4x92x25xf32, #tpu.memory_space<vmem>>, %arg4: memref<4x1xf32, #tpu.memory_space<vmem>>, %arg5: memref<4x1xf32, #tpu.memory_space<vmem>>) attributes {dimension_semantics = [], scalar_prefetch = 0 : i64, scratch_operands = 0 : i64, tpu.core_type = #tpu.core_type<tc>} {
    %c0 = arith.constant 0 : index
    %c0_0 = arith.constant 0 : index
    %0 = vector.load %arg0[%c0, %c0_0] : memref<144x26xf32, #tpu.memory_space<vmem>>, vector<144x26xf32>
    %c0_1 = arith.constant 0 : index
    %c0_2 = arith.constant 0 : index
    %1 = vector.load %arg1[%c0_1, %c0_2] : memref<26x5xf32, #tpu.memory_space<vmem>>, vector<26x5xf32>
    %cst = arith.constant dense<0.000000e+00> : vector<144x5xf32>
    %2 = tpu.matmul %0, %1, %cst {dimension_numbers = #tpu.dot_dimension_numbers<[1], [0], [0], [1], [0, 0, 1, 1], [], []>} : vector<144x26xf32>, vector<26x5xf32>, vector<144x5xf32> -> vector<144x5xf32>
    %cst_3 = arith.constant 0.000000e+00 : f32
    %3 = vector.broadcast %cst_3 : f32 to vector<144x5xf32>
    %4 = arith.maximumf %2, %3 : vector<144x5xf32>
    %5 = vector.extract_strided_slice %4 {offsets = [0, 0], sizes = [92, 5], strides = [1, 1]} : vector<144x5xf32> to vector<92x5xf32>
    %6 = vector.extract_strided_slice %4 {offsets = [1, 0], sizes = [92, 5], strides = [1, 1]} : vector<144x5xf32> to vector<92x5xf32>
    %7 = vector.extract_strided_slice %4 {offsets = [2, 0], sizes = [92, 5], strides = [1, 1]} : vector<144x5xf32> to vector<92x5xf32>
    %8 = vector.extract_strided_slice %4 {offsets = [3, 0], sizes = [92, 5], strides = [1, 1]} : vector<144x5xf32> to vector<92x5xf32>
    %9 = vector.extract_strided_slice %4 {offsets = [4, 0], sizes = [92, 5], strides = [1, 1]} : vector<144x5xf32> to vector<92x5xf32>
    %10 = vector.extract_strided_slice %4 {offsets = [12, 0], sizes = [92, 5], strides = [1, 1]} : vector<144x5xf32> to vector<92x5xf32>
    %11 = vector.extract_strided_slice %4 {offsets = [13, 0], sizes = [92, 5], strides = [1, 1]} : vector<144x5xf32> to vector<92x5xf32>
    %12 = vector.extract_strided_slice %4 {offsets = [14, 0], sizes = [92, 5], strides = [1, 1]} : vector<144x5xf32> to vector<92x5xf32>
    %13 = vector.extract_strided_slice %4 {offsets = [15, 0], sizes = [92, 5], strides = [1, 1]} : vector<144x5xf32> to vector<92x5xf32>
    %14 = vector.extract_strided_slice %4 {offsets = [16, 0], sizes = [92, 5], strides = [1, 1]} : vector<144x5xf32> to vector<92x5xf32>
    %15 = vector.extract_strided_slice %4 {offsets = [24, 0], sizes = [92, 5], strides = [1, 1]} : vector<144x5xf32> to vector<92x5xf32>
    %16 = vector.extract_strided_slice %4 {offsets = [25, 0], sizes = [92, 5], strides = [1, 1]} : vector<144x5xf32> to vector<92x5xf32>
    %17 = vector.extract_strided_slice %4 {offsets = [26, 0], sizes = [92, 5], strides = [1, 1]} : vector<144x5xf32> to vector<92x5xf32>
    %18 = vector.extract_strided_slice %4 {offsets = [27, 0], sizes = [92, 5], strides = [1, 1]} : vector<144x5xf32> to vector<92x5xf32>
    %19 = vector.extract_strided_slice %4 {offsets = [28, 0], sizes = [92, 5], strides = [1, 1]} : vector<144x5xf32> to vector<92x5xf32>
    %20 = vector.extract_strided_slice %4 {offsets = [36, 0], sizes = [92, 5], strides = [1, 1]} : vector<144x5xf32> to vector<92x5xf32>
    %21 = vector.extract_strided_slice %4 {offsets = [37, 0], sizes = [92, 5], strides = [1, 1]} : vector<144x5xf32> to vector<92x5xf32>
    %22 = vector.extract_strided_slice %4 {offsets = [38, 0], sizes = [92, 5], strides = [1, 1]} : vector<144x5xf32> to vector<92x5xf32>
    %23 = vector.extract_strided_slice %4 {offsets = [39, 0], sizes = [92, 5], strides = [1, 1]} : vector<144x5xf32> to vector<92x5xf32>
    %24 = vector.extract_strided_slice %4 {offsets = [40, 0], sizes = [92, 5], strides = [1, 1]} : vector<144x5xf32> to vector<92x5xf32>
    %25 = vector.extract_strided_slice %4 {offsets = [48, 0], sizes = [92, 5], strides = [1, 1]} : vector<144x5xf32> to vector<92x5xf32>
    %26 = vector.extract_strided_slice %4 {offsets = [49, 0], sizes = [92, 5], strides = [1, 1]} : vector<144x5xf32> to vector<92x5xf32>
    %27 = vector.extract_strided_slice %4 {offsets = [50, 0], sizes = [92, 5], strides = [1, 1]} : vector<144x5xf32> to vector<92x5xf32>
    %28 = vector.extract_strided_slice %4 {offsets = [51, 0], sizes = [92, 5], strides = [1, 1]} : vector<144x5xf32> to vector<92x5xf32>
    %29 = vector.extract_strided_slice %4 {offsets = [52, 0], sizes = [92, 5], strides = [1, 1]} : vector<144x5xf32> to vector<92x5xf32>
    %cst_4 = arith.constant 1.000000e+00 : f32
    %30 = vector.broadcast %cst_4 : f32 to vector<92x1xf32>
    %31 = tpu.concatenate %5, %6, %7, %8, %9, %10, %11, %12, %13, %14, %15, %16, %17, %18, %19, %20 in 1 : vector<92x5xf32>, vector<92x5xf32>, vector<92x5xf32>, vector<92x5xf32>, vector<92x5xf32>, vector<92x5xf32>, vector<92x5xf32>, vector<92x5xf32>, vector<92x5xf32>, vector<92x5xf32>, vector<92x5xf32>, vector<92x5xf32>, vector<92x5xf32>, vector<92x5xf32>, vector<92x5xf32>, vector<92x5xf32> -> vector<92x80xf32>
    %32 = tpu.concatenate %21, %22, %23, %24, %25, %26, %27, %28, %29, %30 in 1 : vector<92x5xf32>, vector<92x5xf32>, vector<92x5xf32>, vector<92x5xf32>, vector<92x5xf32>, vector<92x5xf32>, vector<92x5xf32>, vector<92x5xf32>, vector<92x5xf32>, vector<92x1xf32> -> vector<92x46xf32>
    %33 = tpu.concatenate %31, %32 in 1 : vector<92x80xf32>, vector<92x46xf32> -> vector<92x126xf32>
    %c0_5 = arith.constant 0 : index
    %c0_6 = arith.constant 0 : index
    %34 = vector.load %arg2[%c0_5, %c0_6] : memref<126x25xf32, #tpu.memory_space<vmem>>, vector<126x25xf32>
    %cst_7 = arith.constant dense<0.000000e+00> : vector<92x25xf32>
    %35 = tpu.matmul %33, %34, %cst_7 {dimension_numbers = #tpu.dot_dimension_numbers<[1], [0], [0], [1], [0, 0, 1, 1], [], []>} : vector<92x126xf32>, vector<126x25xf32>, vector<92x25xf32> -> vector<92x25xf32>
    %cst_8 = arith.constant 0.000000e+00 : f32
    %36 = vector.broadcast %cst_8 : f32 to vector<92x25xf32>
    %37 = arith.maximumf %35, %36 : vector<92x25xf32>
    %38 = vector.shape_cast %37 : vector<92x25xf32> to vector<1x92x25xf32>
    %c0_9 = arith.constant 0 : index
    %c0_10 = arith.constant 0 : index
    %c0_11 = arith.constant 0 : index
    %39 = vector.load %arg3[%c0_9, %c0_10, %c0_11] : memref<4x92x25xf32, #tpu.memory_space<vmem>>, vector<4x92x25xf32>
    %40 = vector.broadcast %38 : vector<1x92x25xf32> to vector<4x92x25xf32>
    %41 = arith.mulf %40, %39 : vector<4x92x25xf32>
    %cst_12 = arith.constant dense<0.000000e+00> : vector<4x25xf32>
    %42 = vector.multi_reduction <add>, %41, %cst_12 [1] : vector<4x92x25xf32> to vector<4x25xf32>
    %cst_13 = arith.constant dense<0.000000e+00> : vector<4xf32>
    %43 = vector.multi_reduction <add>, %42, %cst_13 [1] : vector<4x25xf32> to vector<4xf32>
    %44 = vector.shape_cast %43 : vector<4xf32> to vector<4x1xf32>
    %c0_14 = arith.constant 0 : index
    %c0_15 = arith.constant 0 : index
    %45 = vector.load %arg4[%c0_14, %c0_15] : memref<4x1xf32, #tpu.memory_space<vmem>>, vector<4x1xf32>
    %46 = arith.addf %44, %45 : vector<4x1xf32>
    %47 = arith.negf %46 : vector<4x1xf32>
    %48 = math.exp %47 : vector<4x1xf32>
    %cst_16 = arith.constant 1.000000e+00 : f32
    %49 = vector.broadcast %cst_16 : f32 to vector<4x1xf32>
    %50 = arith.addf %49, %48 : vector<4x1xf32>
    %51 = arith.divf %49, %50 : vector<4x1xf32>
    %c0_17 = arith.constant 0 : index
    %c0_18 = arith.constant 0 : index
    %52 = vector.load %arg5[%c0_17, %c0_18] : memref<4x1xf32, #tpu.memory_space<vmem>>, vector<4x1xf32>
    tpu.vector_store %arg5[%c0_17, %c0_18], %51 {strides = array<i32>} : memref<4x1xf32, #tpu.memory_space<vmem>>, vector<4x1xf32>,
    return
  }
}

</mosaic_0001>

<bundles_post_ra>
// kernel: advice_model_2layer_forward.1
= control target key start
LH: loop header
LB: loop body
LE: loop exit
PB: predicated region body
PF: predicated region fallthrough
CT: control target
= control target key end

     0   :  { %vm97_vm0 = vcmask 1041408   ;;  %vm42_vm1 = vcmask 211968   ;;  %vm2306_vm2 = vmmov 1   ;;  %vm286_vm4 = vcmask 1046528   ;;  %s2308_s10 = smov 10   ;;  %s2309_s11 = smov 15   ;;  %s4565_s1 = inlined_call_operand.vmem [shape: f32[26,5], index: 1, kind: input, shape index: {}]   ;;  %s4566_s0 = inlined_call_operand.vmem [shape: f32[144,26], index: 0, kind: input, shape index: {}]   ;;  %s4567_s2 = inlined_call_operand.vmem [shape: f32[126,25], index: 2, kind: input, shape index: {}]   ;;  %s4568_s3 = inlined_call_operand.vmem [shape: f32[4,92,25], index: 3, kind: input, shape index: {}]   ;;  %s4569_s4 = inlined_call_operand.vmem [shape: f32[4,1], index: 4, kind: input, shape index: {}]   ;;  %s4570_s5 = inlined_call_operand.vmem [shape: f32[4,1], index: 5, kind: output, shape index: {}]  }
   0x1   :  { %v38_v0 = vld [vmem:[%s4565_s1] sm:$0xff]  ;;  %v39_v1 = vld [vmem:[%s4565_s1 + $0x8] sm:$0xff]  ;;  %v40_v2 = vld [vmem:[%s4565_s1 + $0x10] sm:$0xff]  ;;  %vm346_vm5 = vcmask 1045504   ;;  %vm406_vm6 = vcmask 1044480   ;;  %vm466_vm7 = vcmask 1043456  }
   0x2   :  { %v2225_v3 = vpack.c.bf16 %v39_v1, %v38_v0  ;;  %v41_v4 = vld [vmem:[%s4565_s1 + $0x18] sm:$0x3]  ;;  %v20_v5 = vld [vmem:[%s4566_s0] sm:$0xff]  ;;  %vm2230_vm3 = vmpackc.low %vm97_vm0, %vm2306_vm2  ;;  %s2310_s12 = smov 20   ;;  %s2311_s13 = smov 25   ;;  %vm566_vm8 = vcmask 1042432  }
   0x3   :  { %v2229_v6 = vpack.c.bf16 %v41_v4, %v40_v2  ;;  %2148 = vmatprep.mubr.msk.f32.mxu0 %vm42_vm1, %v20_v5  ;;  %v21_v7 = vld [vmem:[%s4566_s0 + $0x8] sm:$0xff]  ;;  %v22_v8 = vld [vmem:[%s4566_s0 + $0x10] sm:$0xff]  ;;  %v23_v9 = vld [vmem:[%s4566_s0 + $0x18] sm:$0xff]  ;;  %s2312_s14 = smov 30   ;;  %s2313_s15 = smov 35   ;;  %vm689_vm9 = vcmask 1040384  }
   0x4   :  { %2226 = vmatprep.subr.bf16.mxu0 %v2225_v3  ;;  %v24_v10 = vld [vmem:[%s4566_s0 + $0x20] sm:$0xff]  ;;  %v25_v11 = vld [vmem:[%s4566_s0 + $0x28] sm:$0xff]  ;;  %v26_v12 = vld [vmem:[%s4566_s0 + $0x30] sm:$0xff]  ;;  %s2314_s16 = smov 40   ;;  %s2315_s17 = smov 45   ;;  %vm1029_vm10 = vcmask 39936  }
   0x5   :  { %2228 = vmatpush3.bf16.msra.mxu0 %v2225_v3  ;;  %v27_v13 = vld [vmem:[%s4566_s0 + $0x38] sm:$0xff]  ;;  %v28_v14 = vld [vmem:[%s4566_s0 + $0x40] sm:$0xff]  ;;  %v29_v15 = vld [vmem:[%s4566_s0 + $0x48] sm:$0xff]  ;;  %s2316_s18 = smov 50   ;;  %s2317_s19 = smov 55   ;;  %vm4674_vm11 = vcmask 80896  }
   0x6   :  { %2231 = vmatprep.subr.msk.bf16.mxu0 %vm2230_vm3, %v2229_v6  ;;  %v30_v16 = vld [vmem:[%s4566_s0 + $0x50] sm:$0xff]  ;;  %v31_v17 = vld [vmem:[%s4566_s0 + $0x58] sm:$0xff]  ;;  %v32_v18 = vld [vmem:[%s4566_s0 + $0x60] sm:$0xff]  ;;  %s2318_s20 = smov 60   ;;  %s2319_s21 = smov 65   ;;  %vm4673_vm12 = vcmask 121856  }
   0x7   :  { %v33_v19 = vld [vmem:[%s4566_s0 + $0x68] sm:$0xff]  ;;  %v34_v20 = vld [vmem:[%s4566_s0 + $0x70] sm:$0xff]  ;;  %v35_v21 = vld [vmem:[%s4566_s0 + $0x78] sm:$0xff]  ;;  %s2320_s22 = smov 70   ;;  %s2321_s9 = smov 75   ;;  %vm1068_vm13 = vcmask 162816  }
   0x8   :  { %v36_v22 = vld [vmem:[%s4566_s0 + $0x80] sm:$0xff]  ;;  %v37_v23 = vld [vmem:[%s4566_s0 + $0x88] sm:$0xff]  ;;  %s2307_s0 = smov 5   ;;  %vm1081_vm14 = vcmask 203776   ;;  %vm1094_vm15 = vcmask 244736  }
   0x9   :  { %2234 = vmatpush3.bf16.msk.msra.mxu0 %vm2230_vm3, %v2229_v6  ;;  %vm3581_vm3 = vmpackc.low %vm346_vm5, %vm2306_vm2  ;;  %vm1146_vm2 = vcmask 408576  }
   0xc   :  { %2149 = vmatmul.mubr.msk.f32.vlgmr.msra.gmra.mrb[0].mxu0 %vm42_vm1, %v21_v7 }
   0xd   :  { %2151 = vmatprep.mubr.msk.f32.mxu0 %vm42_vm1, %v22_v8 }
  0x10   :  { %2152 = vmatmul.mubr.msk.f32.gmra.mrb[2].mxu0 %vm42_vm1, %v23_v9 }
  0x11   :  { %2154 = vmatprep.mubr.msk.f32.mxu0 %vm42_vm1, %v24_v10 }
  0x14   :  { %2155 = vmatmul.mubr.msk.f32.gmra.mrb[4].mxu0 %vm42_vm1, %v25_v11 }
  0x15   :  { %2157 = vmatprep.mubr.msk.f32.mxu0 %vm42_vm1, %v26_v12 }
  0x18   :  { %2158 = vmatmul.mubr.msk.f32.gmra.mrb[6].mxu0 %vm42_vm1, %v27_v13 }
  0x19   :  { %2160 = vmatprep.mubr.msk.f32.mxu0 %vm42_vm1, %v28_v14 }
  0x1c   :  { %2161 = vmatmul.mubr.msk.f32.gmra.mrb[8].mxu0 %vm42_vm1, %v29_v15 }
  0x1d   :  { %2163 = vmatprep.mubr.msk.f32.mxu0 %vm42_vm1, %v30_v16 }
  0x20   :  { %2164 = vmatmul.mubr.msk.f32.gmra.mrb[10].mxu0 %vm42_vm1, %v31_v17 }
  0x21   :  { %2166 = vmatprep.mubr.msk.f32.mxu0 %vm42_vm1, %v32_v18 }
  0x24   :  { %2167 = vmatmul.mubr.msk.f32.gmra.mrb[12].mxu0 %vm42_vm1, %v33_v19 }
  0x25   :  { %2169 = vmatprep.mubr.msk.f32.mxu0 %vm42_vm1, %v34_v20 }
  0x28   :  { %2170 = vmatmul.mubr.msk.f32.gmra.mrb[14].mxu0 %vm42_vm1, %v35_v21 }
  0x29   :  { %2172 = vmatprep.mubr.msk.f32.mxu0 %vm42_vm1, %v36_v22 }
  0x2c   :  { %2173 = vmatmul.mubr.msk.f32.gmra.mrb[16].mxu0 %vm42_vm1, %v37_v23  ;;  %vm1120_vm1 = vcmask 326656  }
  0xdf   :  { %v2150_v24 = vpop.f32.mrb[0].mxu0 }
  0xe0   :  { %v2439_v25 = vmax.f32 %v2150_v24, 0.0  ;;  %v167_v26 = vpop.f32.mrb[1].mxu0 }
  0xe1   :  { %v2441_v27 = vmax.f32 %v167_v26, 0.0 }
  0xe2   :  { %4676 = vst [vmem:[#allocation2_spill] sm:$0xff] %v2439_v25  ;;  %v288_v28 = vrot.slane %v2439_v25, 1  ;;  %v348_v36 = vrot.slane %v2439_v25, 2  ;;  %v408_v41 = vrot.slane %v2439_v25, 3  ;;  %v468_v47 = vrot.slane %v2439_v25, 4 }
  0xe3   :  { %4677 = vst [vmem:[#allocation3_spill] sm:$0xff] %v2441_v27  ;;  %v2153_v29 = vpop.f32.mrb[2].mxu0  ;;  %v287_v30 = vrot.slane %v2441_v27, 1  ;;  %v347_v35 = vrot.slane %v2441_v27, 2  ;;  %v407_v44 = vrot.slane %v2441_v27, 3  ;;  %v467_v51 = vrot.slane %v2441_v27, 4 }
  0xe4   :  { %v2445_v31 = vmax.f32 %v2153_v29, 0.0  ;;  %v177_v32 = vpop.f32.mrb[3].mxu0  ;;  %v567_v18 = vrot.slane %v2439_v25, 5  ;;  %v628_v22 = vrot.slane %v2439_v25, 6 }
  0xe5   :  { %v2447_v33 = vmax.f32 %v177_v32, 0.0  ;;  %v289_v34 = vsel %vm286_vm4, %v287_v30, %v288_v28  ;;  %v349_v42 = vsel %vm346_vm5, %v347_v35, %v348_v36  ;;  %v409_v49 = vsel %vm406_vm6, %v407_v44, %v408_v41 }
  0xe6   :  { %4678 = vst [vmem:[#allocation4_spill] sm:$0xff] %v2445_v31  ;;  %310 = vrot.lane.b32.xlu0 %v289_v34, %s2307_s0  ;;  %v292_v37 = vrot.slane %v2445_v31, 1  ;;  %v469_v55 = vsel %vm466_vm7, %v467_v51, %v468_v47  ;;  %v472_v62 = vrot.slane %v2445_v31, 4  ;;  %v352_v63 = vrot.slane %v2445_v31, 2 }
  0xe7   :  { %4679 = vst [vmem:[#allocation5_spill] sm:$0xff] %v2447_v33  ;;  %v2156_v38 = vpop.f32.mrb[4].mxu0  ;;  %v290_v39 = vrot.slane %v2447_v33, 1  ;;  %v350_v45 = vrot.slane %v2447_v33, 2  ;;  %v410_v52 = vrot.slane %v2447_v33, 3  ;;  %v470_v57 = vrot.slane %v2447_v33, 4 }
  0xe8   :  { %v187_v40 = vpop.f32.mrb[5].mxu0  ;;  %v568_v1 = vrot.slane %v2447_v33, 5  ;;  %v570_v5 = vrot.slane %v2445_v31, 5  ;;  %v412_v6 = vrot.slane %v2445_v31, 3  ;;  %v629_v11 = vrot.slane %v2447_v33, 6 }
  0xe9   :  { %v293_v43 = vsel %vm286_vm4, %v290_v39, %v292_v37  ;;  %v351_v50 = vsel %vm346_vm5, %v348_v36, %v350_v45  ;;  %v411_v56 = vsel %vm406_vm6, %v408_v41, %v410_v52  ;;  %v471_v60 = vsel %vm466_vm7, %v468_v47, %v470_v57 }
  0xea   :  { %370 = vrot.lane.b32.xlu0 %v349_v42, %s2308_s10  ;;  %314 = vrot.lane.b32.xlu1 %v293_v43, %s2307_s0  ;;  %v291_v61 = vsel %vm286_vm4, %v288_v28, %v290_v39  ;;  %v473_v3 = vsel %vm466_vm7, %v470_v57, %v472_v62  ;;  %v353_v4 = vsel %vm346_vm5, %v350_v45, %v352_v63  ;;  %v4572_v12 = vrot.slane %v2445_v31, 6 }
  0xeb   :  { %v2464_v46 = vpop.f32.mrb[6].mxu0  ;;  %v571_v9 = vsel %vm566_vm8, %v568_v1, %v570_v5  ;;  %v413_v10 = vsel %vm406_vm6, %v410_v52, %v412_v6  ;;  %v2517_v13 = vmax.f32 %v2156_v38, 0.0  ;;  %v2521_v14 = vmax.f32 %v187_v40, 0.0 }
  0xec   :  { %v2467_v48 = vpop.f32.mrb[7].mxu0  ;;  %v632_v15 = vsel %vm97_vm0, %v629_v11, %v4572_v12  ;;  %v569_v19 = vsel %vm566_vm8, %v567_v18, %v568_v1  ;;  %v630_v24 = vsel %vm97_vm0, %v628_v22, %v629_v11  ;;  %v4571_v28 = vrot.slane %v2447_v33, 7 }
  0xed   :  { %v2529_v16 = vrot.slane %v2517_v13, 3  ;;  %v294_v17 = vrot.slane %v2521_v14, 1  ;;  %v356_v21 = vrot.slane %v2517_v13, 2  ;;  %v354_v23 = vrot.slane %v2521_v14, 2 }
  0xee   :  { %430 = vrot.lane.b32.xlu0 %v409_v49, %s2309_s11  ;;  %372 = vrot.lane.b32.xlu1 %v351_v50, %s2308_s10  ;;  %v2556_v29 = vmax.f32 %v2467_v48, 0.0  ;;  %v690_v30 = vrot.slane %v2439_v25, 7  ;;  %v296_v35 = vrot.slane %v2517_v13, 1  ;;  %v414_v36 = vrot.slane %v2521_v14, 3 }
  0xef   :  { %v2475_v53 = vpop.f32.mrb[8].mxu0  ;;  %v2540_v20 = vsel %vm286_vm4, %v292_v37, %v294_v17  ;;  %v2552_v26 = vsel %vm346_vm5, %v354_v23, %v356_v21  ;;  %v2566_v34 = vsel %vm346_vm5, %v352_v63, %v354_v23  ;;  %v476_v37 = vrot.slane %v2517_v13, 4 }
  0xf0   :  { %v2477_v54 = vpop.f32.mrb[9].mxu0  ;;  %v692_v32 = vsel %vm689_vm9, %v690_v30, %v4571_v28  ;;  %v478_v38 = vrot.slane %v2556_v29, 4  ;;  %v2576_v39 = vsel %vm286_vm4, %v294_v17, %v296_v35  ;;  %v2579_v40 = vsel %vm406_vm6, %v412_v6, %v414_v36 }
  0xf1   :  { %v474_v41 = vrot.slane %v2521_v14, 4  ;;  %v4573_v44 = vrot.slane %v2521_v14, 5  ;;  %v418_v50 = vrot.slane %v2556_v29, 3  ;;  %v2617_v51 = vsel %vm406_vm6, %v414_v36, %v2529_v16 }
  0xf2   :  { %490 = vrot.lane.b32.xlu0 %v469_v55, %s2310_s12  ;;  %432 = vrot.lane.b32.xlu1 %v411_v56, %s2309_s11  ;;  %v2587_v42 = vsel %vm466_vm7, %v476_v37, %v478_v38  ;;  %v2623_v52 = vrot.slane %v2556_v29, 5  ;;  %v2626_v55 = vmax.f32 %v2464_v46, 0.0  ;;  %v298_v56 = vrot.slane %v2556_v29, 1 }
  0xf3   :  { %v2484_v58 = vpop.f32.mrb[10].mxu0  ;;  %v2592_v43 = vsel %vm466_vm7, %v472_v62, %v474_v41  ;;  %v573_v48 = vsel %vm566_vm8, %v570_v5, %v4573_v44  ;;  %v2609_v49 = vsel %vm466_vm7, %v474_v41, %v476_v37  ;;  %v2633_v57 = vrot.slane %v2556_v29, 6 }
  0xf4   :  { %v2486_v59 = vpop.f32.mrb[11].mxu0  ;;  %v358_v46 = vrot.slane %v2556_v29, 2  ;;  %v2645_v62 = vrot.slane %v2556_v29, 7  ;;  %v300_v1 = vrot.slane %v2626_v55, 1  ;;  %v2681_v11 = vsel %vm406_vm6, %v2529_v16, %v418_v50 }
  0xf5   :  { %v480_v17 = vrot.slane %v2626_v55, 4  ;;  %v701_v18 = vrot.slane %v2626_v55, 7 }
  0xf6   :  { %492 = vrot.lane.b32.xlu1 %v471_v60, %s2310_s12  ;;  %312 = vrot.lane.b32.xlu0 %v291_v61, %s2307_s0  ;;  %v360_v61 = vrot.slane %v2626_v55, 2  ;;  %v2669_v6 = vsel %vm346_vm5, %v356_v21, %v358_v46  ;;  %v639_v21 = vrot.slane %v2626_v55, 6 }
  0xf7   :  { %v2494_v0 = vpop.f32.mrb[12].mxu0 }
  0xf8   :  { %v2497_v2 = vpop.f32.mrb[13].mxu0  ;;  %v2648_v63 = vsel %vm346_vm5, %v358_v46, %v360_v61  ;;  %v640_v23 = vsel %vm97_vm0, %v2633_v57, %v639_v21 }
  0xfa   :  { %531 = vrot.lane.b32.xlu1 %v473_v3, %s2311_s13  ;;  %374 = vrot.lane.b32.xlu0 %v353_v4, %s2308_s10  ;;  %v2657_v4 = vsel %vm286_vm4, %v298_v56, %v300_v1 }
  0xfb   :  { %v2507_v7 = vpop.f32.mrb[14].mxu0 }
  0xfc   :  { %v2509_v8 = vpop.f32.mrb[15].mxu0 }
  0xfe   :  { %594 = vrot.lane.b32.xlu1 %v571_v9, %s2312_s14  ;;  %434 = vrot.lane.b32.xlu0 %v413_v10, %s2309_s11  ;;  %v578_v9 = vrot.slane %v2626_v55, 5  ;;  %v2677_v10 = vmax.f32 %v2477_v54, 0.0  ;;  %v2694_v54 = vsel %vm466_vm7, %v478_v38, %v480_v17 }
  0xff   :  { %v2599_v45 = vpop.f32.mrb[16].mxu0 }
 0x100   :  { %v2601_v47 = vpop.f32.mrb[17].mxu0  ;;  %v302_v22 = vrot.slane %v2677_v10, 1  ;;  %v422_v30 = vrot.slane %v2677_v10, 3  ;;  %v362_v36 = vrot.slane %v2677_v10, 2 }
 0x102   :  { %655 = vrot.lane.b32.xlu1 %v632_v15, %s2313_s15  ;;  %529 = vrot.lane.b32.xlu0 %v471_v60, %s2311_s13  ;;  %v2636_v60 = vsel %vm286_vm4, %v296_v35, %v298_v56  ;;  %v579_v15 = vsel %vm566_vm8, %v2623_v52, %v578_v9  ;;  %v2725_v37 = vsel %vm346_vm5, %v360_v61, %v362_v36  ;;  %v482_v56 = vrot.slane %v2677_v10, 4 }
 0x103   :  { %4683 = vst [vmem:[#allocation9_spill] sm:$0xff] %v2725_v37  ;;  %v580_v61 = vrot.slane %v2677_v10, 5 }
 0x104   :  { %v2746_v46 = vsel %vm466_vm7, %v480_v17, %v482_v56  ;;  %v2765_v17 = vmax.f32 %v2486_v59, 0.0 }
 0x106   :  { %494 = vrot.lane.b32.xlu0 %v473_v3, %s2310_s12  ;;  %1273 = vrot.lane.b32.xlu1 %v2529_v16, %s2309_s11  ;;  %v420_v3 = vrot.slane %v2626_v55, 3  ;;  %v702_v16 = vsel %vm689_vm9, %v2645_v62, %v701_v18  ;;  %4688 = vst [vmem:[#allocation14_spill] sm:$0xff] %v2765_v17 }
 0x108   :  { %v2660_v5 = vsel %vm406_vm6, %v418_v50, %v420_v3  ;;  %v2717_v35 = vsel %vm406_vm6, %v420_v3, %v422_v30 }
 0x109   :  { %4682 = vst [vmem:[#allocation8_spill] sm:$0xff] %v2717_v35 }
 0x10a   :  { %592 = vrot.lane.b32.xlu0 %v569_v19, %s2312_s14  ;;  %316 = vrot.lane.b32.xlu1 %v2540_v20, %s2307_s0  ;;  %v2691_v19 = vmax.f32 %v2475_v53, 0.0  ;;  %v2706_v53 = vsel %vm286_vm4, %v300_v1, %v302_v22  ;;  %v581_v1 = vsel %vm566_vm8, %v578_v9, %v580_v61 }
 0x10c   :  { %4680 = vst [vmem:[#allocation6_spill] sm:$0xff] %v2691_v19  ;;  %v424_v41 = vrot.slane %v2691_v19, 3  ;;  %v582_v3 = vrot.slane %v2691_v19, 5 }
 0x10e   :  { %653 = vrot.lane.b32.xlu0 %v630_v24, %s2313_s15  ;;  %378 = vrot.lane.b32.xlu1 %v2552_v26, %s2308_s10  ;;  %v304_v24 = vrot.slane %v2691_v19, 1 }
 0x112   :  { %715 = vrot.lane.b32.xlu0 %v692_v32, %s2314_s16  ;;  %376 = vrot.lane.b32.xlu1 %v2566_v34, %s2308_s10  ;;  %v2714_v32 = vsel %vm286_vm4, %v302_v22, %v304_v24  ;;  %v703_v22 = vrot.slane %v2677_v10, 7 }
 0x113   :  { %4681 = vst [vmem:[#allocation7_spill] sm:$0xff] %v2714_v32 }
 0x116   :  { %318 = vrot.lane.b32.xlu0 %v2576_v39, %s2307_s0  ;;  %436 = vrot.lane.b32.xlu1 %v2579_v40, %s2309_s11 }
 0x11a   :  { %533 = vrot.lane.b32.xlu0 %v2592_v43, %s2311_s13  ;;  %496 = vrot.lane.b32.xlu1 %v2592_v43, %s2310_s12 }
 0x11e   :  { %596 = vrot.lane.b32.xlu0 %v573_v48, %s2312_s14  ;;  %535 = vrot.lane.b32.xlu1 %v2609_v49, %s2311_s13 }
 0x122   :  { %438 = vrot.lane.b32.xlu1 %v2617_v51, %s2309_s11  ;;  %1297 = vrot.lane.b32.xlu0 %v418_v50, %s2310_s12  ;;  %v2737_v50 = vsel %vm406_vm6, %v422_v30, %v424_v41 }
 0x123   :  { %4685 = vst [vmem:[#allocation11_spill] sm:$0xff] %v2737_v50 }
 0x126   :  { %1369 = vrot.lane.b32.xlu1 %v2623_v52, %s2312_s14  ;;  %1340 = vrot.lane.b32.xlu0 %v478_v38, %s2311_s13  ;;  %v364_v38 = vrot.slane %v2691_v19, 2 }
 0x128   :  { %v2734_v48 = vsel %vm346_vm5, %v362_v36, %v364_v38  ;;  %v704_v36 = vsel %vm689_vm9, %v701_v18, %v703_v22  ;;  %v306_v18 = vrot.slane %v2765_v17, 1 }
 0x129   :  { %4684 = vst [vmem:[#allocation10_spill] sm:$0xff] %v2734_v48 }
 0x12a   :  { %1395 = vrot.lane.b32.xlu0 %v2633_v57, %s2313_s15  ;;  %320 = vrot.lane.b32.xlu1 %v2636_v60, %s2307_s0  ;;  %v2794_v44 = vsel %vm286_vm4, %v304_v24, %v306_v18  ;;  %v366_v24 = vrot.slane %v2765_v17, 2 }
 0x12b   :  { %4694 = vst [vmem:[#allocation20_spill] sm:$0xff] %v2794_v44 }
 0x12e   :  { %1421 = vrot.lane.b32.xlu0 %v2645_v62, %s2314_s16  ;;  %382 = vrot.lane.b32.xlu1 %v2648_v63, %s2308_s10 }
 0x132   :  { %322 = vrot.lane.b32.xlu0 %v2657_v4, %s2307_s0  ;;  %442 = vrot.lane.b32.xlu1 %v2660_v5, %s2309_s11 }
 0x136   :  { %380 = vrot.lane.b32.xlu0 %v2669_v6, %s2308_s10  ;;  %1299 = vrot.lane.b32.xlu1 %v2660_v5, %s2310_s12 }
 0x13a   :  { %440 = vrot.lane.b32.xlu0 %v2681_v11, %s2309_s11  ;;  %602 = vrot.lane.b32.xlu1 %v579_v15, %s2312_s14  ;;  %v583_v15 = vsel %vm566_vm8, %v580_v61, %v582_v3  ;;  %v641_v61 = vrot.slane %v2677_v10, 6 }
 0x13c   :  { %v642_v59 = vsel %vm97_vm0, %v639_v21, %v641_v61  ;;  %v705_v21 = vrot.slane %v2691_v19, 7 }
 0x13e   :  { %539 = vrot.lane.b32.xlu0 %v2694_v54, %s2311_s13  ;;  %725 = vrot.lane.b32.xlu1 %v702_v16, %s2314_s16  ;;  %v484_v16 = vrot.slane %v2691_v19, 4 }
 0x140   :  { %v2768_v30 = vsel %vm466_vm7, %v482_v56, %v484_v16  ;;  %v643_v56 = vrot.slane %v2691_v19, 6 }
 0x141   :  { %4689 = vst [vmem:[#allocation15_spill] sm:$0xff] %v2768_v30 }
 0x142   :  { %663 = vrot.lane.b32.xlu0 %v640_v23, %s2313_s15  ;;  %324 = vrot.lane.b32.xlu1 %v2706_v53, %s2307_s0  ;;  %v2757_v23 = vmax.f32 %v2484_v58, 0.0  ;;  %v644_v12 = vsel %vm97_vm0, %v641_v61, %v643_v56 }
 0x144   :  { %4686 = vst [vmem:[#allocation12_spill] sm:$0xff] %v2757_v23  ;;  %v2776_v58 = vrot.slane %v2757_v23, 1 }
 0x146   :  { %326 = vrot.lane.b32.xlu0 %v2714_v32, %s2307_s0  ;;  %444 = vrot.lane.b32.xlu1 %v2717_v35, %s2309_s11 }
 0x14a   :  { %384 = vrot.lane.b32.xlu0 %v2725_v37, %s2308_s10  ;;  %1301 = vrot.lane.b32.xlu1 %v2717_v35, %s2310_s12 }
 0x14e   :  { %386 = vrot.lane.b32.xlu0 %v2734_v48, %s2308_s10  ;;  %446 = vrot.lane.b32.xlu1 %v2737_v50, %s2309_s11 }
 0x152   :  { %541 = vrot.lane.b32.xlu0 %v2746_v46, %s2311_s13  ;;  %604 = vrot.lane.b32.xlu1 %v581_v1, %s2312_s14 }
 0x156   :  { %1303 = vrot.lane.b32.xlu0 %v2737_v50, %s2310_s12  ;;  %606 = vrot.lane.b32.xlu1 %v583_v15, %s2312_s14 }
 0x158   :  { %v2762_v9 = vpop.permute.xlu0 %310 }
 0x159   :  { %4687 = vst [vmem:[#allocation13_spill] sm:$0xff] %v2762_v9  ;;  %v2826_v9 = vrot.slane %v2757_v23, 2 }
 0x15a   :  { %543 = vrot.lane.b32.xlu0 %v2768_v30, %s2311_s13  ;;  %727 = vrot.lane.b32.xlu1 %v704_v36, %s2314_s16 }
 0x15b   :  { %4702 = vst [vmem:[#allocation28_spill] sm:$0xff] %v2826_v9 }
 0x15c   :  { %v2778_v1 = vpop.permute.xlu0 %370  ;;  %v2780_v15 = vpop.permute.xlu1 %314 }
 0x15d   :  { %4690 = vst [vmem:[#allocation16_spill] sm:$0xff] %v2778_v1  ;;  %4691 = vst [vmem:[#allocation17_spill] sm:$0xff] %v2780_v15  ;;  %v426_v15 = vrot.slane %v2765_v17, 3 }
 0x15e   :  { %665 = vrot.lane.b32.xlu0 %v642_v59, %s2313_s15  ;;  %332 = vrot.lane.b32.xlu1 %v2776_v58, %s2307_s0 }
 0x15f   :  { %v2807_v61 = vsel %vm406_vm6, %v424_v41, %v426_v15  ;;  %v486_v41 = vrot.slane %v2765_v17, 4 }
 0x160   :  { %v2788_v28 = vpop.permute.xlu0 %430  ;;  %v2790_v36 = vpop.permute.xlu1 %372  ;;  %4697 = vst [vmem:[#allocation23_spill] sm:$0xff] %v2807_v61 }
 0x161   :  { %4692 = vst [vmem:[#allocation18_spill] sm:$0xff] %v2788_v28  ;;  %4693 = vst [vmem:[#allocation19_spill] sm:$0xff] %v2790_v36  ;;  %v706_v28 = vsel %vm689_vm9, %v703_v22, %v705_v21  ;;  %v2822_v22 = vsel %vm346_vm5, %v364_v38, %v366_v24  ;;  %v2841_v38 = vsel %vm346_vm5, %v366_v24, %v2826_v9  ;;  %v645_v24 = vrot.slane %v2765_v17, 6 }
 0x162   :  { %667 = vrot.lane.b32.xlu0 %v644_v12, %s2313_s15  ;;  %328 = vrot.lane.b32.xlu1 %v2794_v44, %s2307_s0  ;;  %4701 = vst [vmem:[#allocation27_spill] sm:$0xff] %v2822_v22  ;;  %4706 = vst [vmem:[#allocation32_spill] sm:$0xff] %v2841_v38 }
 0x164   :  { %v2801_v59 = vpop.permute.xlu0 %490  ;;  %v2803_v1 = vpop.permute.xlu1 %432 }
 0x165   :  { %4695 = vst [vmem:[#allocation21_spill] sm:$0xff] %v2801_v59  ;;  %4696 = vst [vmem:[#allocation22_spill] sm:$0xff] %v2803_v1  ;;  %v2819_v59 = vsel %vm286_vm4, %v306_v18, %v2776_v58  ;;  %v2837_v18 = vsel %vm466_vm7, %v484_v16, %v486_v41  ;;  %v584_v1 = vrot.slane %v2765_v17, 5  ;;  %v2854_v16 = vrot.slane %v2757_v23, 3 }
 0x166   :  { %729 = vrot.lane.b32.xlu0 %v706_v28, %s2314_s16  ;;  %1305 = vrot.lane.b32.xlu1 %v2807_v61, %s2310_s12  ;;  %4700 = vst [vmem:[#allocation26_spill] sm:$0xff] %v2819_v59  ;;  %4705 = vst [vmem:[#allocation31_spill] sm:$0xff] %v2837_v18 }
 0x167   :  { %4709 = vst [vmem:[#allocation35_spill] sm:$0xff] %v2854_v16 }
 0x168   :  { %v2813_v12 = vpop.permute.xlu1 %492  ;;  %v2815_v27 = vpop.permute.xlu0 %312 }
 0x169   :  { %4698 = vst [vmem:[#allocation24_spill] sm:$0xff] %v2813_v12  ;;  %4699 = vst [vmem:[#allocation25_spill] sm:$0xff] %v2815_v27 }
 0x16a   :  { %330 = vrot.lane.b32.xlu0 %v2819_v59, %s2307_s0  ;;  %388 = vrot.lane.b32.xlu1 %v2822_v22, %s2308_s10  ;;  %v586_v22 = vrot.slane %v2757_v23, 5 }
 0x16c   :  { %v2832_v28 = vpop.permute.xlu1 %531  ;;  %v2834_v12 = vpop.permute.xlu0 %374 }
 0x16d   :  { %4703 = vst [vmem:[#allocation29_spill] sm:$0xff] %v2832_v28  ;;  %4704 = vst [vmem:[#allocation30_spill] sm:$0xff] %v2834_v12  ;;  %v585_v12 = vsel %vm566_vm8, %v582_v3, %v584_v1  ;;  %v2869_v3 = vsel %vm406_vm6, %v426_v15, %v2854_v16  ;;  %v707_v15 = vrot.slane %v2765_v17, 7 }
 0x16e   :  { %545 = vrot.lane.b32.xlu0 %v2837_v18, %s2311_s13  ;;  %390 = vrot.lane.b32.xlu1 %v2841_v38, %s2308_s10  ;;  %4713 = vst [vmem:[#allocation39_spill] sm:$0xff] %v2869_v3  ;;  %v2873_v38 = vrot.slane %v2757_v23, 4 }
 0x170   :  { %v2848_v36 = vpop.permute.xlu1 %594  ;;  %v2850_v28 = vpop.permute.xlu0 %434  ;;  %4714 = vst [vmem:[#allocation40_spill] sm:$0xff] %v2873_v38 }
 0x171   :  { %4707 = vst [vmem:[#allocation33_spill] sm:$0xff] %v2848_v36  ;;  %4708 = vst [vmem:[#allocation34_spill] sm:$0xff] %v2850_v28  ;;  %v2865_v36 = vmax.f32 %v2497_v2, 0.0  ;;  %v646_v28 = vsel %vm97_vm0, %v643_v56, %v645_v24  ;;  %v2884_v2 = vsel %vm466_vm7, %v486_v41, %v2873_v38  ;;  %v708_v41 = vsel %vm689_vm9, %v705_v21, %v707_v15 }
 0x172   :  { %448 = vrot.lane.b32.xlu0 %v2807_v61, %s2309_s11  ;;  %608 = vrot.lane.b32.xlu1 %v585_v12, %s2312_s14  ;;  %4716 = vst [vmem:[#allocation42_spill] sm:$0xff] %v2884_v2  ;;  %v587_v21 = vsel %vm566_vm8, %v584_v1, %v586_v22 }
 0x173   :  { %4712 = vst [vmem:[#allocation38_spill] sm:$0xff] %v2865_v36  ;;  %v824_v56 = vrot.slane %v2865_v36, 1  ;;  %v2906_v59 = vrot.slane %v2865_v36, 4 }
 0x174   :  { %v2860_v25 = vpop.permute.xlu1 %655  ;;  %v2862_v27 = vpop.permute.xlu0 %529 }
 0x175   :  { %4710 = vst [vmem:[#allocation36_spill] sm:$0xff] %v2860_v25  ;;  %4711 = vst [vmem:[#allocation37_spill] sm:$0xff] %v2862_v27  ;;  %v2902_v61 = vsel %vm286_vm4, %v2776_v58, %v824_v56  ;;  %v2919_v58 = vsel %vm466_vm7, %v2873_v38, %v2906_v59  ;;  %v709_v38 = vrot.slane %v2757_v23, 7 }
 0x176   :  { %450 = vrot.lane.b32.xlu0 %v2869_v3, %s2309_s11  ;;  %669 = vrot.lane.b32.xlu1 %v646_v28, %s2313_s15  ;;  %v2893_v28 = vmax.f32 %v2494_v0, 0.0  ;;  %4720 = vst [vmem:[#allocation46_spill] sm:$0xff] %v2902_v61  ;;  %4721 = vst [vmem:[#allocation47_spill] sm:$0xff] %v2906_v59 }
 0x177   :  { %4723 = vst [vmem:[#allocation49_spill] sm:$0xff] %v2919_v58 }
 0x178   :  { %v2878_v12 = vpop.permute.xlu0 %494  ;;  %v2880_v27 = vpop.permute.xlu1 %1273  ;;  %4717 = vst [vmem:[#allocation43_spill] sm:$0xff] %v2893_v28  ;;  %v651_v17 = vrot.slane %v2893_v28, 6 }
 0x179   :  { %4715 = vst [vmem:[#allocation41_spill] sm:$0xff] %v2878_v12 }
 0x17a   :  { %547 = vrot.lane.b32.xlu0 %v2884_v2, %s2311_s13  ;;  %1307 = vrot.lane.b32.xlu1 %v2869_v3, %s2310_s12  ;;  %v826_v3 = vrot.slane %v2893_v28, 1  ;;  %v588_v2 = vrot.slane %v2865_v36, 5 }
 0x17c   :  { %v2895_v12 = vpop.permute.xlu0 %592  ;;  %v2897_v25 = vpop.permute.xlu1 %316 }
 0x17d   :  { %4718 = vst [vmem:[#allocation44_spill] sm:$0xff] %v2895_v12  ;;  %4719 = vst [vmem:[#allocation45_spill] sm:$0xff] %v2897_v25  ;;  %v647_v25 = vrot.slane %v2757_v23, 6 }
 0x17e   :  { %731 = vrot.lane.b32.xlu1 %v708_v41, %s2314_s16  ;;  %1229 = vrot.lane.b32.xlu0 %v2902_v61, %s2307_s0  ;;  %v2932_v61 = vsel %vm286_vm4, %v824_v56, %v826_v3  ;;  %v908_v56 = vrot.slane %v2865_v36, 3 }
 0x17f   :  { %v648_v1 = vsel %vm97_vm0, %v645_v24, %v647_v25  ;;  %4726 = vst [vmem:[#allocation52_spill] sm:$0xff] %v2932_v61  ;;  %v589_v24 = vsel %vm566_vm8, %v586_v22, %v588_v2 }
 0x180   :  { %v2911_v0 = vpop.permute.xlu0 %653  ;;  %v2913_v12 = vpop.permute.xlu1 %378 }
 0x181   :  { %4722 = vst [vmem:[#allocation48_spill] sm:$0xff] %v2911_v0 }
 0x182   :  { %610 = vrot.lane.b32.xlu1 %v587_v21, %s2312_s14  ;;  %549 = vrot.lane.b32.xlu0 %v2919_v58, %s2311_s13 }
 0x184   :  { %v2926_v41 = vpop.permute.xlu0 %715  ;;  %v2928_v0 = vpop.permute.xlu1 %376 }
 0x185   :  { %4724 = vst [vmem:[#allocation50_spill] sm:$0xff] %v2926_v41  ;;  %4725 = vst [vmem:[#allocation51_spill] sm:$0xff] %v2928_v0  ;;  %v710_v41 = vsel %vm689_vm9, %v707_v15, %v709_v38  ;;  %v4590_v0 = vrot.slane %v2893_v28, 2  ;;  %v649_v15 = vrot.slane %v2865_v36, 6 }
 0x186   :  { %671 = vrot.lane.b32.xlu1 %v648_v1, %s2313_s15  ;;  %1231 = vrot.lane.b32.xlu0 %v2932_v61, %s2307_s0  ;;  %v866_v1 = vrot.slane %v2865_v36, 2 }
 0x188   :  { %v2939_v21 = vpop.permute.xlu0 %318  ;;  %v2941_v58 = vpop.permute.xlu1 %436  ;;  %v2961_v22 = vsel %vm346_vm5, %v866_v1, %v4590_v0  ;;  %v910_v0 = vrot.slane %v2893_v28, 3 }
 0x189   :  { %4727 = vst [vmem:[#allocation53_spill] sm:$0xff] %v2941_v58  ;;  %v2956_v58 = vsel %vm406_vm6, %v2854_v16, %v908_v56  ;;  %4731 = vst [vmem:[#allocation57_spill] sm:$0xff] %v2961_v22 }
 0x18a   :  { %733 = vrot.lane.b32.xlu1 %v710_v41, %s2314_s16  ;;  %612 = vrot.lane.b32.xlu0 %v589_v24, %s2312_s14  ;;  %4730 = vst [vmem:[#allocation56_spill] sm:$0xff] %v2956_v58 }
 0x18c   :  { %v2950_v23 = vpop.permute.xlu0 %533  ;;  %v2952_v61 = vpop.permute.xlu1 %496 }
 0x18d   :  { %4728 = vst [vmem:[#allocation54_spill] sm:$0xff] %v2950_v23  ;;  %4729 = vst [vmem:[#allocation55_spill] sm:$0xff] %v2952_v61  ;;  %v2974_v61 = vsel %vm346_vm5, %v2826_v9, %v866_v1  ;;  %v650_v23 = vsel %vm97_vm0, %v647_v25, %v649_v15 }
 0x18e   :  { %1309 = vrot.lane.b32.xlu1 %v2956_v58, %s2310_s12  ;;  %1253 = vrot.lane.b32.xlu0 %v2961_v22, %s2308_s10  ;;  %4734 = vst [vmem:[#allocation60_spill] sm:$0xff] %v2974_v61 }
 0x190   :  { %v2968_v41 = vpop.permute.xlu0 %596  ;;  %v2970_v24 = vpop.permute.xlu1 %535 }
 0x191   :  { %4732 = vst [vmem:[#allocation58_spill] sm:$0xff] %v2968_v41  ;;  %4733 = vst [vmem:[#allocation59_spill] sm:$0xff] %v2970_v24  ;;  %v2986_v41 = vsel %vm406_vm6, %v908_v56, %v910_v0  ;;  %v711_v24 = vrot.slane %v2865_v36, 7  ;;  %v950_v56 = vrot.slane %v2893_v28, 4 }
 0x192   :  { %1251 = vrot.lane.b32.xlu1 %v2974_v61, %s2308_s10  ;;  %673 = vrot.lane.b32.xlu0 %v650_v23, %s2313_s15  ;;  %4736 = vst [vmem:[#allocation62_spill] sm:$0xff] %v2986_v41  ;;  %v2998_v23 = vmax.f32 %v2509_v8, 0.0 }
 0x193   :  { %v712_v61 = vsel %vm689_vm9, %v709_v38, %v711_v24  ;;  %v3015_v8 = vsel %vm466_vm7, %v2906_v59, %v950_v56 }
 0x194   :  { %v2981_v16 = vpop.permute.xlu1 %438  ;;  %v2983_v22 = vpop.permute.xlu0 %1297  ;;  %4738 = vst [vmem:[#allocation64_spill] sm:$0xff] %v2998_v23  ;;  %4741 = vst [vmem:[#allocation67_spill] sm:$0xff] %v3015_v8  ;;  %v3020_v9 = vrot.slane %v2998_v23, 1  ;;  %v3052_v35 = vrot.slane %v2998_v23, 4  ;;  %v1361_v37 = vrot.slane %v2998_v23, 5 }
 0x195   :  { %4735 = vst [vmem:[#allocation61_spill] sm:$0xff] %v2981_v16  ;;  %v590_v16 = vrot.slane %v2893_v28, 5 }
 0x196   :  { %1275 = vrot.lane.b32.xlu1 %v2956_v58, %s2309_s11  ;;  %1277 = vrot.lane.b32.xlu0 %v2986_v41, %s2309_s11  ;;  %v3007_v58 = vmax.f32 %v2507_v7, 0.0  ;;  %4742 = vst [vmem:[#allocation68_spill] sm:$0xff] %v3020_v9  ;;  %v3032_v59 = vsel %vm286_vm4, %v826_v3, %v3020_v9  ;;  %4746 = vst [vmem:[#allocation72_spill] sm:$0xff] %v3052_v35 }
 0x197   :  { %v591_v38 = vsel %vm566_vm8, %v588_v2, %v590_v16  ;;  %4744 = vst [vmem:[#allocation70_spill] sm:$0xff] %v3032_v59  ;;  %v713_v2 = vrot.slane %v2893_v28, 7 }
 0x198   :  { %v2993_v25 = vpop.permute.xlu1 %1369  ;;  %v2995_v1 = vpop.permute.xlu0 %1340  ;;  %4739 = vst [vmem:[#allocation65_spill] sm:$0xff] %v3007_v58  ;;  %v4610_v50 = vrot.slane %v3007_v58, 1  ;;  %v4621_v48 = vrot.slane %v3007_v58, 2 }
 0x199   :  { %4737 = vst [vmem:[#allocation63_spill] sm:$0xff] %v2993_v25  ;;  %v714_v19 = vsel %vm689_vm9, %v711_v24, %v713_v2  ;;  %v1389_v25 = vrot.slane %v3007_v58, 6 }
 0x19a   :  { %1311 = vrot.lane.b32.xlu1 %v2986_v41, %s2310_s12  ;;  %735 = vrot.lane.b32.xlu0 %v712_v61, %s2314_s16  ;;  %v652_v41 = vsel %vm97_vm0, %v649_v15, %v651_v17  ;;  %v1226_v3 = vsel %vm286_vm4, %v3020_v9, %v4610_v50  ;;  %v3049_v15 = vrot.slane %v2998_v23, 3  ;;  %v3066_v50 = vsel %vm466_vm7, %v950_v56, %v3052_v35 }
 0x19b   :  { %4748 = vst [vmem:[#allocation74_spill] sm:$0xff] %v3066_v50  ;;  %v3069_v9 = vrot.slane %v2998_v23, 2 }
 0x19c   :  { %v3009_v36 = vpop.permute.xlu0 %1395  ;;  %v3011_v44 = vpop.permute.xlu1 %320  ;;  %4745 = vst [vmem:[#allocation71_spill] sm:$0xff] %v3049_v15  ;;  %v3062_v24 = vsel %vm406_vm6, %v910_v0, %v3049_v15  ;;  %v4751_v0 = vrot.slane %v2893_v28, 2  ;;  %v1362_v28 = vsel %vm566_vm8, %v590_v16, %v1361_v37  ;;  %v1387_v16 = vrot.slane %v2998_v23, 6 }
 0x19d   :  { %4740 = vst [vmem:[#allocation66_spill] sm:$0xff] %v3009_v36  ;;  %4747 = vst [vmem:[#allocation73_spill] sm:$0xff] %v3062_v24  ;;  %v1248_v18 = vsel %vm346_vm5, %v3069_v9, %v4621_v48  ;;  %v1413_v36 = vrot.slane %v2998_v23, 7 }
 0x19e   :  { %1342 = vrot.lane.b32.xlu1 %v3015_v8, %s2311_s13  ;;  %614 = vrot.lane.b32.xlu0 %v591_v38, %s2312_s14  ;;  %4749 = vst [vmem:[#allocation75_spill] sm:$0xff] %v3069_v9  ;;  %v3084_v56 = vsel %vm346_vm5, %v4751_v0, %v3069_v9  ;;  %v4625_v0 = vrot.slane %v3007_v58, 3 }
 0x19f   :  { %4752 = vst [vmem:[#allocation77_spill] sm:$0xff] %v3084_v56 }
 0x1a0   :  { %v3025_v7 = vpop.permute.xlu0 %1421  ;;  %v3027_v61 = vpop.permute.xlu1 %382 }
 0x1a1   :  { %4743 = vst [vmem:[#allocation69_spill] sm:$0xff] %v3025_v7  ;;  %v3116_v7 = vmax.f32 %v2599_v45, 0.0 }
 0x1a2   :  { %675 = vrot.lane.b32.xlu0 %v652_v41, %s2313_s15  ;;  %1233 = vrot.lane.b32.xlu1 %v3032_v59, %s2307_s0 }
 0x1a3   :  { %v4632_v45 = vrot.slane %v3116_v7, 3 }
 0x1a4   :  { %v3039_v38 = vpop.permute.xlu0 %322  ;;  %v3041_v8 = vpop.permute.xlu1 %442 }
 0x1a6   :  { %737 = vrot.lane.b32.xlu0 %v714_v19, %s2314_s16  ;;  %1235 = vrot.lane.b32.xlu1 %v1226_v3, %s2307_s0 }
 0x1a8   :  { %v3056_v41 = vpop.permute.xlu0 %380  ;;  %v3058_v59 = vpop.permute.xlu1 %1299 }
 0x1aa   :  { %1313 = vrot.lane.b32.xlu0 %v3062_v24, %s2310_s12  ;;  %1344 = vrot.lane.b32.xlu1 %v3066_v50, %s2311_s13 }
 0x1ac   :  { %v3076_v19 = vpop.permute.xlu0 %440  ;;  %v3078_v3 = vpop.permute.xlu1 %602 }
 0x1ad   :  { %4750 = vst [vmem:[#allocation76_spill] sm:$0xff] %v3078_v3 }
 0x1ae   :  { %1255 = vrot.lane.b32.xlu0 %v3084_v56, %s2308_s10  ;;  %1257 = vrot.lane.b32.xlu1 %v1248_v18, %s2308_s10  ;;  %v1270_v18 = vsel %vm406_vm6, %v3049_v15, %v4625_v0  ;;  %v3112_v56 = vrot.slane %v3007_v58, 4  ;;  %v1388_v15 = vsel %vm97_vm0, %v651_v17, %v1387_v16  ;;  %v1363_v17 = vrot.slane %v3007_v58, 5 }
 0x1b0   :  { %v3094_v50 = vpop.permute.xlu0 %539  ;;  %v3096_v32 = vpop.permute.xlu1 %725  ;;  %4756 = vst [vmem:[#allocation81_spill] sm:$0xff] %v3112_v56  ;;  %v3127_v0 = vsel %vm466_vm7, %v3052_v35, %v3112_v56  ;;  %v1414_v35 = vsel %vm689_vm9, %v713_v2, %v1413_v36  ;;  %v1364_v23 = vsel %vm566_vm8, %v1361_v37, %v1363_v17 }
 0x1b1   :  { %4753 = vst [vmem:[#allocation78_spill] sm:$0xff] %v3094_v50  ;;  %4754 = vst [vmem:[#allocation79_spill] sm:$0xff] %v3096_v32 }
 0x1b2   :  { %1279 = vrot.lane.b32.xlu0 %v3062_v24, %s2309_s11  ;;  %1371 = vrot.lane.b32.xlu1 %v1362_v28, %s2312_s14  ;;  %4759 = vst [vmem:[#allocation84_spill] sm:$0xff] %v3127_v0 }
 0x1b4   :  { %v3103_v48 = vpop.permute.xlu0 %663  ;;  %v3105_v9 = vpop.permute.xlu1 %324 }
 0x1b5   :  { %4755 = vst [vmem:[#allocation80_spill] sm:$0xff] %v3103_v48 }
 0x1b6   :  { %1315 = vrot.lane.b32.xlu0 %v1270_v18, %s2310_s12  ;;  %1281 = vrot.lane.b32.xlu1 %v1270_v18, %s2309_s11  ;;  %v3136_v18 = vmax.f32 %v2601_v47, 0.0 }
 0x1b8   :  { %v3120_v28 = vpop.permute.xlu0 %326  ;;  %v3122_v24 = vpop.permute.xlu1 %444  ;;  %4760 = vst [vmem:[#allocation85_spill] sm:$0xff] %v3136_v18  ;;  %v1227_v47 = vrot.slane %v3136_v18, 1  ;;  %v1365_v48 = vrot.slane %v3136_v18, 5 }
 0x1b9   :  { %4757 = vst [vmem:[#allocation82_spill] sm:$0xff] %v3120_v28  ;;  %4758 = vst [vmem:[#allocation83_spill] sm:$0xff] %v3122_v24 }
 0x1ba   :  { %1346 = vrot.lane.b32.xlu0 %v3127_v0, %s2311_s13  ;;  %1397 = vrot.lane.b32.xlu1 %v1388_v15, %s2313_s15 }
 0x1bc   :  { %v3138_v28 = vpop.permute.xlu0 %384  ;;  %v3140_v32 = vpop.permute.xlu1 %1301 }
 0x1bd   :  { %4761 = vst [vmem:[#allocation86_spill] sm:$0xff] %v3140_v32 }
 0x1be   :  { %1423 = vrot.lane.b32.xlu1 %v1414_v35, %s2314_s16  ;;  %1321 = vrot.lane.b32.xlu0 %v4632_v45, %s2310_s12  ;;  %v1249_v45 = vrot.slane %v3136_v18, 2 }
 0x1c0   :  { %v3148_v15 = vpop.permute.xlu0 %386  ;;  %v3150_v0 = vpop.permute.xlu1 %446 }
 0x1c1   :  { %4762 = vst [vmem:[#allocation87_spill] sm:$0xff] %v3148_v15  ;;  %4763 = vst [vmem:[#allocation88_spill] sm:$0xff] %v3150_v0  ;;  %v1390_v15 = vsel %vm97_vm0, %v1387_v16, %v1389_v25  ;;  %v1415_v0 = vrot.slane %v3007_v58, 7 }
 0x1c2   :  { %1373 = vrot.lane.b32.xlu1 %v1364_v23, %s2312_s14  ;;  %1239 = vrot.lane.b32.xlu0 %v1227_v47, %s2307_s0  ;;  %v1271_v23 = vrot.slane %v3136_v18, 3 }
 0x1c3   :  { %v1416_v24 = vsel %vm689_vm9, %v1413_v36, %v1415_v0 }
 0x1c4   :  { %v3157_v2 = vpop.permute.xlu0 %541  ;;  %v3159_v35 = vpop.permute.xlu1 %604 }
 0x1c5   :  { %4764 = vst [vmem:[#allocation89_spill] sm:$0xff] %v3157_v2  ;;  %4765 = vst [vmem:[#allocation90_spill] sm:$0xff] %v3159_v35  ;;  %v4770_v2 = vrot.slane %v3007_v58, 1 }
 0x1c6   :  { %1399 = vrot.lane.b32.xlu1 %v1390_v15, %s2313_s15  ;;  %1261 = vrot.lane.b32.xlu0 %v1249_v45, %s2308_s10  ;;  %v1338_v15 = vrot.slane %v3116_v7, 4 }
 0x1c8   :  { %v3166_v37 = vpop.permute.xlu0 %1303  ;;  %v3168_v30 = vpop.permute.xlu1 %606 }
 0x1c9   :  { %4766 = vst [vmem:[#allocation91_spill] sm:$0xff] %v3166_v37  ;;  %4767 = vst [vmem:[#allocation92_spill] sm:$0xff] %v3168_v30  ;;  %v1228_v37 = vsel %vm286_vm4, %v4770_v2, %v1227_v47  ;;  %v1336_v30 = vrot.slane %v3136_v18, 4  ;;  %vm4675_vm4 = vcmask 367616  }
 0x1ca   :  { %1425 = vrot.lane.b32.xlu1 %v1416_v24, %s2314_s16  ;;  %1285 = vrot.lane.b32.xlu0 %v1271_v23, %s2309_s11 }
 0x1cc   :  { %v3174_v35 = vpop.permute.xlu0 %543  ;;  %v3176_v16 = vpop.permute.xlu1 %727 }
 0x1cd   :  { %4768 = vst [vmem:[#allocation93_spill] sm:$0xff] %v3174_v35  ;;  %4769 = vst [vmem:[#allocation94_spill] sm:$0xff] %v3176_v16  ;;  %v1367_v35 = vrot.slane %v3116_v7, 5  ;;  %v1337_v16 = vsel %vm466_vm7, %v3112_v56, %v1336_v30 }
 0x1ce   :  { %1352 = vrot.lane.b32.xlu1 %v1338_v15, %s2311_s13  ;;  %1237 = vrot.lane.b32.xlu0 %v1228_v37, %s2307_s0  ;;  %v1393_v37 = vrot.slane %v3116_v7, 6 }
 0x1d0   :  { %v3185_v36 = vpop.permute.xlu0 %665  ;;  %v3187_v24 = vpop.permute.xlu1 %332 }
 0x1d1   :  { %4771 = vst [vmem:[#allocation95_spill] sm:$0xff] %v3185_v36  ;;  %4772 = vst [vmem:[#allocation96_spill] sm:$0xff] %v3187_v24  ;;  %v1366_v36 = vsel %vm566_vm8, %v1363_v17, %v1365_v48  ;;  %v1391_v24 = vrot.slane %v3136_v18, 6 }
 0x1d2   :  { %1379 = vrot.lane.b32.xlu1 %v1367_v35, %s2312_s14  ;;  %1348 = vrot.lane.b32.xlu0 %v1337_v16, %s2311_s13  ;;  %v1419_v16 = vrot.slane %v3116_v7, 7 }
 0x1d4   :  { %v3195_v47 = vpop.permute.xlu0 %667  ;;  %v3197_v2 = vpop.permute.xlu1 %328 }
 0x1d5   :  { %4773 = vst [vmem:[#allocation97_spill] sm:$0xff] %v3195_v47  ;;  %4774 = vst [vmem:[#allocation98_spill] sm:$0xff] %v3197_v2  ;;  %v1392_v47 = vsel %vm97_vm0, %v1389_v25, %v1391_v24  ;;  %v1417_v2 = vrot.slane %v3136_v18, 7 }
 0x1d6   :  { %1405 = vrot.lane.b32.xlu1 %v1393_v37, %s2313_s15  ;;  %1375 = vrot.lane.b32.xlu0 %v1366_v36, %s2312_s14  ;;  %v4779_v36 = vrot.slane %v3007_v58, 3 }
 0x1d8   :  { %v3204_v56 = vpop.permute.xlu0 %729  ;;  %v3206_v32 = vpop.permute.xlu1 %1305 }
 0x1d9   :  { %4775 = vst [vmem:[#allocation99_spill] sm:$0xff] %v3204_v56  ;;  %4776 = vst [vmem:[#allocation100_spill] sm:$0xff] %v3206_v32  ;;  %v1272_v56 = vsel %vm406_vm6, %v4779_v36, %v1271_v23  ;;  %v1418_v32 = vsel %vm689_vm9, %v1415_v0, %v1417_v2 }
 0x1da   :  { %1431 = vrot.lane.b32.xlu1 %v1419_v16, %s2314_s16  ;;  %1401 = vrot.lane.b32.xlu0 %v1392_v47, %s2313_s15  ;;  %v4782_v47 = vrot.slane %v3007_v58, 2 }
 0x1dc   :  { %v3213_v17 = vpop.permute.xlu0 %330  ;;  %v3215_v3 = vpop.permute.xlu1 %388 }
 0x1dd   :  { %4777 = vst [vmem:[#allocation101_spill] sm:$0xff] %v3213_v17  ;;  %4778 = vst [vmem:[#allocation102_spill] sm:$0xff] %v3215_v3  ;;  %v1250_v17 = vsel %vm346_vm5, %v4782_v47, %v1249_v45  ;;  %v1368_v3 = vsel %vm566_vm8, %v1365_v48, %v1367_v35  ;;  %v4785_v48 = vrot.slane %v3116_v7, 3  ;;  %v574_v35 = vrot.slane %v2517_v13, 5 }
 0x1de   :  { %1317 = vrot.lane.b32.xlu1 %v1272_v56, %s2310_s12  ;;  %1427 = vrot.lane.b32.xlu0 %v1418_v32, %s2314_s16  ;;  %v1394_v32 = vsel %vm97_vm0, %v1391_v24, %v1393_v37  ;;  %v1339_v37 = vsel %vm466_vm7, %v1336_v30, %v1338_v15  ;;  %v4791_v15 = vrot.slane %v2447_v33, 7  ;;  %vm1159_vm5 = vcmask 449536  }
 0x1df   :  { %v1296_v45 = vsel %vm406_vm6, %v1271_v23, %v4785_v48  ;;  %v633_v23 = vrot.slane %v2521_v14, 6  ;;  %vm1172_vm6 = vcmask 490496   ;;  %vm1185_vm7 = vcmask 531456  }
 0x1e0   :  { %v3223_v25 = vpop.permute.xlu0 %545  ;;  %v3225_v18 = vpop.permute.xlu1 %390 }
 0x1e1   :  { %4780 = vst [vmem:[#allocation103_spill] sm:$0xff] %v3223_v25  ;;  %4781 = vst [vmem:[#allocation104_spill] sm:$0xff] %v3225_v18 }
 0x1e2   :  { %1259 = vrot.lane.b32.xlu1 %v1250_v17, %s2308_s10  ;;  %1377 = vrot.lane.b32.xlu0 %v1368_v3, %s2312_s14  ;;  %v1420_v3 = vsel %vm689_vm9, %v1417_v2, %v1419_v16  ;;  %v4787_v17 = vrot.slane %v2521_v14, 5  ;;  %v693_v2 = vrot.slane %v2445_v31, 7 }
 0x1e4   :  { %v3233_v36 = vpop.permute.xlu0 %448  ;;  %v3235_v0 = vpop.permute.xlu1 %608  ;;  %v575_v7 = vsel %vm566_vm8, %v4787_v17, %v574_v35  ;;  %v694_v48 = vsel %vm689_vm9, %v4791_v15, %v693_v2  ;;  %v695_v17 = vrot.slane %v2521_v14, 7 }
 0x1e5   :  { %4783 = vst [vmem:[#allocation105_spill] sm:$0xff] %v3235_v0 }
 0x1e6   :  { %1283 = vrot.lane.b32.xlu1 %v1272_v56, %s2309_s11  ;;  %1403 = vrot.lane.b32.xlu0 %v1394_v32, %s2313_s15  ;;  %v4790_v32 = vrot.slane %v2445_v31, 6  ;;  %v696_v15 = vsel %vm689_vm9, %v693_v2, %v695_v17  ;;  %v697_v2 = vrot.slane %v2517_v13, 7 }
 0x1e8   :  { %v3240_v18 = vpop.permute.xlu0 %450  ;;  %v3242_v58 = vpop.permute.xlu1 %669  ;;  %v634_v30 = vsel %vm97_vm0, %v4790_v32, %v633_v23 }
 0x1e9   :  { %4784 = vst [vmem:[#allocation106_spill] sm:$0xff] %v3242_v58 }
 0x1ea   :  { %1319 = vrot.lane.b32.xlu1 %v1296_v45, %s2310_s12  ;;  %1429 = vrot.lane.b32.xlu0 %v1420_v3, %s2314_s16 }
 0x1ec   :  { %v3251_v24 = vpop.permute.xlu0 %547  ;;  %v3253_v56 = vpop.permute.xlu1 %1307 }
 0x1ed   :  { %4786 = vst [vmem:[#allocation107_spill] sm:$0xff] %v3251_v24 }
 0x1ee   :  { %1350 = vrot.lane.b32.xlu1 %v1339_v37, %s2311_s13  ;;  %598 = vrot.lane.b32.xlu0 %v575_v7, %s2312_s14  ;;  %v635_v37 = vrot.slane %v2517_v13, 6 }
 0x1f0   :  { %v3263_v16 = vpop.permute.xlu1 %731  ;;  %v3265_v47 = vpop.permute.xlu0 %1229 }
 0x1f1   :  { %4788 = vst [vmem:[#allocation108_spill] sm:$0xff] %v3263_v16  ;;  %4789 = vst [vmem:[#allocation109_spill] sm:$0xff] %v3265_v47 }
 0x1f2   :  { %657 = vrot.lane.b32.xlu1 %v634_v30, %s2313_s15  ;;  %717 = vrot.lane.b32.xlu0 %v694_v48, %s2314_s16  ;;  %v636_v30 = vsel %vm97_vm0, %v633_v23, %v635_v37 }
 0x1f4   :  { %v3275_v45 = vpop.permute.xlu1 %610  ;;  %v3277_v3 = vpop.permute.xlu0 %549 }
 0x1f5   :  { %4792 = vst [vmem:[#allocation110_spill] sm:$0xff] %v3275_v45  ;;  %4793 = vst [vmem:[#allocation111_spill] sm:$0xff] %v3277_v3 }
 0x1f6   :  { %751 = vrot.lane.b32.xlu1 %v2447_v33, %s2315_s17  ;;  %498 = vrot.lane.b32.xlu0 %v2609_v49, %s2310_s12 }
 0x1f8   :  { %v3285_v7 = vpop.permute.xlu1 %671  ;;  %v3287_v32 = vpop.permute.xlu0 %1231 }
 0x1f9   :  { %4794 = vst [vmem:[#allocation112_spill] sm:$0xff] %v3285_v7  ;;  %4795 = vst [vmem:[#allocation113_spill] sm:$0xff] %v3287_v32  ;;  %v698_v32 = vsel %vm689_vm9, %v695_v17, %v697_v2  ;;  %v577_v17 = vsel %vm566_vm8, %v574_v35, %v2623_v52  ;;  %v638_v52 = vsel %vm97_vm0, %v635_v37, %v2633_v57  ;;  %vm1107_vm0 = vcmask 285696  }
 0x1fa   :  { %659 = vrot.lane.b32.xlu1 %v636_v30, %s2313_s15  ;;  %719 = vrot.lane.b32.xlu0 %v696_v15, %s2314_s16  ;;  %v700_v37 = vsel %vm689_vm9, %v697_v2, %v2645_v62  ;;  %vm1198_vm9 = vcmask 572416  }
 0x1fc   :  { %v3293_v48 = vpop.permute.xlu1 %733  ;;  %v3295_v47 = vpop.permute.xlu0 %612 }
 0x1fd   :  { %4796 = vst [vmem:[#allocation114_spill] sm:$0xff] %v3293_v48  ;;  %4797 = vst [vmem:[#allocation115_spill] sm:$0xff] %v3295_v47 }
 0x1fe   :  { %753 = vrot.lane.b32.xlu1 %v2445_v31, %s2315_s17  ;;  %788 = vrot.lane.b32.xlu0 %v2445_v31, %s2316_s18 }
 0x200   :  { %v3301_v33 = vpop.permute.xlu1 %1309  ;;  %v3303_v23 = vpop.permute.xlu0 %1253 }
 0x201   :  { %4798 = vst [vmem:[#allocation116_spill] sm:$0xff] %v3303_v23 }
 0x202   :  { %500 = vrot.lane.b32.xlu1 %v2587_v42, %s2310_s12  ;;  %537 = vrot.lane.b32.xlu0 %v2587_v42, %s2311_s13 }
 0x204   :  { %v3310_v30 = vpop.permute.xlu1 %1251  ;;  %v3312_v15 = vpop.permute.xlu0 %673 }
 0x205   :  { %4799 = vst [vmem:[#allocation117_spill] sm:$0xff] %v3310_v30  ;;  %4800 = vst [vmem:[#allocation118_spill] sm:$0xff] %v3312_v15 }
 0x206   :  { %721 = vrot.lane.b32.xlu1 %v698_v32, %s2314_s16  ;;  %755 = vrot.lane.b32.xlu0 %v2521_v14, %s2315_s17 }
 0x208   :  { %v3318_v31 = vpop.permute.xlu1 %1275  ;;  %v3320_v23 = vpop.permute.xlu0 %1277 }
 0x209   :  { %4801 = vst [vmem:[#allocation119_spill] sm:$0xff] %v3320_v23 }
 0x20a   :  { %790 = vrot.lane.b32.xlu1 %v2521_v14, %s2316_s18  ;;  %830 = vrot.lane.b32.xlu0 %v2540_v20, %s2317_s19 }
 0x20c   :  { %v3326_v30 = vpop.permute.xlu1 %1311  ;;  %v3328_v15 = vpop.permute.xlu0 %735 }
 0x20d   :  { %4802 = vst [vmem:[#allocation120_spill] sm:$0xff] %v3326_v30  ;;  %4803 = vst [vmem:[#allocation121_spill] sm:$0xff] %v3328_v15 }
 0x20e   :  { %600 = vrot.lane.b32.xlu1 %v577_v17, %s2312_s14  ;;  %757 = vrot.lane.b32.xlu0 %v2517_v13, %s2315_s17 }
 0x210   :  { %v3335_v32 = vpop.permute.xlu1 %1342  ;;  %v3337_v23 = vpop.permute.xlu0 %614 }
 0x211   :  { %4804 = vst [vmem:[#allocation122_spill] sm:$0xff] %v3337_v23 }
 0x212   :  { %792 = vrot.lane.b32.xlu1 %v2517_v13, %s2316_s18  ;;  %832 = vrot.lane.b32.xlu0 %v2576_v39, %s2317_s19 }
 0x214   :  { %v3343_v20 = vpop.permute.xlu0 %675  ;;  %v3345_v30 = vpop.permute.xlu1 %1233 }
 0x215   :  { %4805 = vst [vmem:[#allocation123_spill] sm:$0xff] %v3343_v20  ;;  %4806 = vst [vmem:[#allocation124_spill] sm:$0xff] %v3345_v30 }
 0x216   :  { %872 = vrot.lane.b32.xlu1 %v2566_v34, %s2318_s20  ;;  %661 = vrot.lane.b32.xlu0 %v638_v52, %s2313_s15 }
 0x218   :  { %v3352_v35 = vpop.permute.xlu0 %737  ;;  %v3354_v17 = vpop.permute.xlu1 %1235 }
 0x219   :  { %4807 = vst [vmem:[#allocation125_spill] sm:$0xff] %v3352_v35 }
 0x21a   :  { %794 = vrot.lane.b32.xlu1 %v2556_v29, %s2316_s18  ;;  %834 = vrot.lane.b32.xlu0 %v2636_v60, %s2317_s19 }
 0x21c   :  { %v3360_v39 = vpop.permute.xlu0 %1313  ;;  %v3362_v30 = vpop.permute.xlu1 %1344 }
 0x21e   :  { %874 = vrot.lane.b32.xlu1 %v2552_v26, %s2318_s20  ;;  %914 = vrot.lane.b32.xlu0 %v2579_v40, %s2319_s21 }
 0x220   :  { %v3368_v34 = vpop.permute.xlu0 %1255  ;;  %v3370_v57 = vpop.permute.xlu1 %1257 }
 0x222   :  { %502 = vrot.lane.b32.xlu1 %v2694_v54, %s2310_s12  ;;  %723 = vrot.lane.b32.xlu0 %v700_v37, %s2314_s16 }
 0x224   :  { %v3377_v60 = vpop.permute.xlu0 %1279  ;;  %v3379_v52 = vpop.permute.xlu1 %1371 }
 0x225   :  { %4808 = vst [vmem:[#allocation126_spill] sm:$0xff] %v3377_v60  ;;  %v1627_v60 = vld [vmem:[%s4567_s2 + $0x20] sm:$0xff] }
 0x226   :  { %836 = vrot.lane.b32.xlu1 %v2657_v4, %s2317_s19  ;;  %876 = vrot.lane.b32.xlu0 %v2669_v6, %s2318_s20  ;;  %v1623_v4 = vld [vmem:[%s4567_s2] sm:$0xff] }
 0x228   :  { %v3385_v26 = vpop.permute.xlu0 %1315  ;;  %v3387_v40 = vpop.permute.xlu1 %1281 }
 0x229   :  { %4809 = vst [vmem:[#allocation127_spill] sm:$0xff] %v3385_v26  ;;  %v1626_v26 = vld [vmem:[%s4567_s2 + $0x18] sm:$0xff] }
 0x22a   :  { %916 = vrot.lane.b32.xlu1 %v2617_v51, %s2319_s21  ;;  %954 = vrot.lane.b32.xlu0 %v2592_v43, %s2320_s22  ;;  %v1624_v51 = vld [vmem:[%s4567_s2 + $0x8] sm:$0xff] }
 0x22b   :  { %v2235_v6 = vpack.c.bf16 %v1624_v51, %v1623_v4 }
 0x22c   :  { %v3393_v62 = vpop.permute.xlu0 %1346  ;;  %v3395_v2 = vpop.permute.xlu1 %1397 }
 0x22d   :  { %4810 = vst [vmem:[#allocation128_spill] sm:$0xff] %v3393_v62  ;;  %2236 = vmatprep.subr.bf16.mxu0 %v2235_v6  ;;  %v1625_v62 = vld [vmem:[%s4567_s2 + $0x10] sm:$0xff]  ;;  %2269 = vmatprep.subr.bf16.mxu1 %v2235_v6 }
 0x22e   :  { %504 = vrot.lane.b32.xlu1 %v2746_v46, %s2310_s12  ;;  %759 = vrot.lane.b32.xlu0 %v2556_v29, %s2315_s17  ;;  %v2239_v4 = vpack.c.bf16 %v1626_v26, %v1625_v62 }
 0x22f   :  { %2238 = vmatpush3.bf16.msra.mxu0 %v2235_v6  ;;  %2277 = vmatpush3.bf16.msra.mxu1 %v2235_v6  ;;  %v1629_v6 = vld [vmem:[%s4567_s2 + $0x30] sm:$0xff] }
 0x230   :  { %v3407_v43 = vpop.permute.xlu1 %1423  ;;  %v3409_v37 = vpop.permute.xlu0 %1321  ;;  %2240 = vmatprep.subr.bf16.mxu0 %v2239_v4  ;;  %2270 = vmatprep.subr.bf16.mxu1 %v2239_v4 }
 0x231   :  { %4811 = vst [vmem:[#allocation129_spill] sm:$0xff] %v3409_v37 }
 0x232   :  { %878 = vrot.lane.b32.xlu1 %v2648_v63, %s2318_s20  ;;  %918 = vrot.lane.b32.xlu0 %v2681_v11, %s2319_s21  ;;  %v1628_v63 = vld [vmem:[%s4567_s2 + $0x28] sm:$0xff] }
 0x233   :  { %v2243_v11 = vpack.c.bf16 %v1628_v63, %v1627_v60  ;;  %2242 = vmatpush3.bf16.msra.mxu0 %v2239_v4  ;;  %2278 = vmatpush3.bf16.msra.mxu1 %v2239_v4  ;;  %v1035_v63 = vsel %vm1029_vm10, %v2517_v13, %v3011_v44  ;;  %v1632_v13 = vld [vmem:[%s4567_s2 + $0x48] sm:$0xff]  ;;  %v1036_v44 = vsel %vm1029_vm10, %v2556_v29, %v3039_v38 }
 0x234   :  { %v3421_v51 = vpop.permute.xlu1 %1373  ;;  %v3423_v37 = vpop.permute.xlu0 %1239 }
 0x235   :  { %4812 = vst [vmem:[#allocation130_spill] sm:$0xff] %v3423_v37  ;;  %2244 = vmatprep.subr.bf16.mxu0 %v2243_v11  ;;  %2271 = vmatprep.subr.bf16.mxu1 %v2243_v11  ;;  %v1630_v37 = vld [vmem:[%s4567_s2 + $0x38] sm:$0xff] }
 0x236   :  { %956 = vrot.lane.b32.xlu1 %v2609_v49, %s2320_s22  ;;  %993 = vrot.lane.b32.xlu0 %v2609_v49, %s2321_s9  ;;  %v2247_v49 = vpack.c.bf16 %v1630_v37, %v1629_v6  ;;  %v1034_v37 = vsel %vm1029_vm10, %v2521_v14, %v2939_v21  ;;  %v1631_v6 = vld [vmem:[%s4567_s2 + $0x40] sm:$0xff] }
 0x237   :  { %2246 = vmatpush3.bf16.msra.mxu0 %v2243_v11  ;;  %2279 = vmatpush3.bf16.msra.mxu1 %v2243_v11  ;;  %v1048_v11 = vsel %vm4674_vm11, %v1035_v63, %v3056_v41  ;;  %v2251_v41 = vpack.c.bf16 %v1632_v13, %v1631_v6  ;;  %v1633_v63 = vld [vmem:[%s4567_s2 + $0x50] sm:$0xff]  ;;  %v3490_v29 = vsel %vm4674_vm11, %v1034_v37, %v2913_v12  ;;  %v1635_v6 = vld [vmem:[%s4567_s2 + $0x60] sm:$0xff] }
 0x238   :  { %v3435_v26 = vpop.permute.xlu1 %1399  ;;  %v3437_v62 = vpop.permute.xlu0 %1261  ;;  %2248 = vmatprep.subr.bf16.mxu0 %v2247_v49  ;;  %2272 = vmatprep.subr.bf16.mxu1 %v2247_v49  ;;  %v3476_v14 = vsel %vm4673_vm12, %v1048_v11, %v3076_v19  ;;  %v1049_v19 = vsel %vm4674_vm11, %v1036_v44, %v3027_v61  ;;  %v1451_v61 = vsel %vm4673_vm12, %v3490_v29, %v2880_v27  ;;  %v4816_v44 = vld [vmem:[#allocation76_spill] sm:$0xff] }
 0x239   :  { %4813 = vst [vmem:[#allocation131_spill] sm:$0xff] %v3476_v14  ;;  %v1459_v11 = vsel %vm1068_vm13, %v3476_v14, %v3058_v59  ;;  %v3525_v27 = vsel %vm4673_vm12, %v1049_v19, %v3041_v8  ;;  %v4818_v8 = vld [vmem:[#allocation80_spill] sm:$0xff]  ;;  %v4819_v19 = vld [vmem:[#allocation89_spill] sm:$0xff]  ;;  %v4830_v14 = vld [vmem:[#allocation95_spill] sm:$0xff] }
 0x23a   :  { %761 = vrot.lane.b32.xlu1 %v2626_v55, %s2315_s17  ;;  %796 = vrot.lane.b32.xlu0 %v2626_v55, %s2316_s18  ;;  %v1472_v12 = vsel %vm1081_vm14, %v1459_v11, %v3094_v50 }
 0x23b   :  { %2250 = vmatpush3.bf16.msra.mxu0 %v2247_v49  ;;  %2280 = vmatpush3.bf16.msra.mxu1 %v2247_v49  ;;  %v1634_v49 = vld [vmem:[%s4567_s2 + $0x58] sm:$0xff] }
 0x23c   :  { %v3449_v60 = vpop.permute.xlu1 %1425  ;;  %v3451_v4 = vpop.permute.xlu0 %1285  ;;  %v2255_v38 = vpack.c.bf16 %v1634_v49, %v1633_v63  ;;  %2252 = vmatprep.subr.bf16.mxu0 %v2251_v41  ;;  %2273 = vmatprep.subr.bf16.mxu1 %v2251_v41  ;;  %v4817_v63 = vld [vmem:[#allocation86_spill] sm:$0xff] }
 0x23e   :  { %920 = vrot.lane.b32.xlu1 %v2660_v5, %s2319_s21  ;;  %958 = vrot.lane.b32.xlu0 %v2587_v42, %s2320_s22 }
 0x23f   :  { %2254 = vmatpush3.bf16.msra.mxu0 %v2251_v41  ;;  %2281 = vmatpush3.bf16.msra.mxu1 %v2251_v41  ;;  %v1485_v41 = vsel %vm1094_vm15, %v1472_v12, %v4816_v44  ;;  %v4823_v12 = vld [vmem:[#allocation91_spill] sm:$0xff]  ;;  %v1637_v44 = vld [vmem:[%s4567_s2 + $0x70] sm:$0xff] }
 0x240   :  { %v3478_v5 = vpop.permute.xlu1 %1352  ;;  %v3480_v21 = vpop.permute.xlu0 %1237  ;;  %2256 = vmatprep.subr.bf16.mxu0 %v2255_v38  ;;  %2274 = vmatprep.subr.bf16.mxu1 %v2255_v38  ;;  %v1498_v49 = vsel %vm1107_vm0, %v1485_v41, %v4818_v8  ;;  %v4828_v8 = vld [vmem:[#allocation90_spill] sm:$0xff] }
 0x241   :  { %4814 = vst [vmem:[#allocation132_spill] sm:$0xff] %v3478_v5  ;;  %v4840_v5 = vld [vmem:[#allocation87_spill] sm:$0xff] }
 0x242   :  { %995 = vrot.lane.b32.xlu1 %v2587_v42, %s2321_s9  ;;  %838 = vrot.lane.b32.xlu0 %v2706_v53, %s2317_s19  ;;  %v1037_v42 = vsel %vm1029_vm10, %v2626_v55, %v3105_v9  ;;  %v1636_v55 = vld [vmem:[%s4567_s2 + $0x68] sm:$0xff]  ;;  %v1458_v9 = vsel %vm1068_vm13, %v1451_v61, %v2983_v22  ;;  %v1460_v22 = vsel %vm1068_vm13, %v3525_v27, %v4817_v63 }
 0x243   :  { %v1050_v59 = vsel %vm4674_vm11, %v1037_v42, %v3138_v28  ;;  %v2259_v28 = vpack.c.bf16 %v1636_v55, %v1635_v6  ;;  %v1471_v13 = vsel %vm1081_vm14, %v1458_v9, %v2995_v1  ;;  %v1473_v11 = vsel %vm1081_vm14, %v1460_v22, %v4819_v19  ;;  %v4820_v42 = vld [vmem:[#allocation83_spill] sm:$0xff]  ;;  %2258 = vmatpush3.bf16.msra.mxu0 %v2255_v38  ;;  %v4824_v9 = vld [vmem:[#allocation93_spill] sm:$0xff] }
 0x244   :  { %v3506_v37 = vpop.permute.xlu1 %1379  ;;  %v3508_v53 = vpop.permute.xlu0 %1348  ;;  %v3544_v61 = vsel %vm4673_vm12, %v1050_v59, %v4820_v42  ;;  %2282 = vmatpush3.bf16.msra.mxu1 %v2255_v38  ;;  %v4825_v59 = vld [vmem:[#allocation15_spill] sm:$0xff] }
 0x245   :  { %4815 = vst [vmem:[#allocation133_spill] sm:$0xff] %v3506_v37  ;;  %4821 = vst [vmem:[#allocation86_spill] sm:$0xff] %v3544_v61  ;;  %v1461_v55 = vsel %vm1068_vm13, %v3544_v61, %v4823_v12  ;;  %2260 = vmatprep.subr.bf16.mxu0 %v2259_v28  ;;  %2275 = vmatprep.subr.bf16.mxu1 %v2259_v28  ;;  %v4826_v63 = vld [vmem:[#allocation63_spill] sm:$0xff]  ;;  %v1486_v12 = vsel %vm1094_vm15, %v1473_v11, %v4828_v8 }
 0x246   :  { %798 = vrot.lane.b32.xlu1 %v2677_v10, %s2316_s18  ;;  %997 = vrot.lane.b32.xlu0 %v2694_v54, %s2321_s9  ;;  %v1474_v41 = vsel %vm1081_vm14, %v1461_v55, %v4824_v9  ;;  %v1484_v22 = vsel %vm1094_vm15, %v1471_v13, %v4826_v63  ;;  %v4827_v38 = vld [vmem:[#allocation79_spill] sm:$0xff]  ;;  %v4829_v55 = vld [vmem:[#allocation66_spill] sm:$0xff]  ;;  %v1499_v13 = vsel %vm1107_vm0, %v1486_v12, %v4830_v14 }
 0x247   :  { %v1511_v42 = vsel %vm1120_vm1, %v1498_v49, %v4827_v38  ;;  %v1497_v50 = vsel %vm1107_vm0, %v1484_v22, %v4829_v55  ;;  %2262 = vmatpush3.bf16.msra.mxu0 %v2259_v28  ;;  %v4835_v55 = vld [vmem:[#allocation92_spill] sm:$0xff]  ;;  %v4836_v9 = vld [vmem:[#allocation82_spill] sm:$0xff]  ;;  %v4838_v37 = vld [vmem:[#allocation7_spill] sm:$0xff] }
 0x248   :  { %v3546_v6 = vpop.permute.xlu1 %1405  ;;  %v3548_v1 = vpop.permute.xlu0 %1375  ;;  %2283 = vmatpush3.bf16.msra.mxu1 %v2259_v28  ;;  %v1487_v12 = vsel %vm1094_vm15, %v1474_v41, %v4835_v55  ;;  %v4839_v28 = vld [vmem:[#allocation9_spill] sm:$0xff] }
 0x249   :  { %4822 = vst [vmem:[#allocation89_spill] sm:$0xff] %v3546_v6  ;;  %v4834_v6 = vld [vmem:[#allocation69_spill] sm:$0xff] }
 0x24a   :  { %960 = vrot.lane.b32.xlu1 %v2694_v54, %s2320_s22  ;;  %506 = vrot.lane.b32.xlu0 %v4825_v59, %s2310_s12  ;;  %v1638_v54 = vld [vmem:[%s4567_s2 + $0x78] sm:$0x3f]  ;;  %v1510_v22 = vsel %vm1120_vm1, %v1497_v50, %v4834_v6  ;;  %v4841_v6 = vld [vmem:[#allocation94_spill] sm:$0xff]  ;;  %s2322_s2 = smov 80  }
 0x24b   :  { %v2263_v11 = vpack.c.bf16 %v1638_v54, %v1637_v44  ;;  %v1038_v44 = vsel %vm1029_vm10, %v2677_v10, %v4836_v9  ;;  %v4837_v54 = vld [vmem:[#allocation97_spill] sm:$0xff]  ;;  %v1512_v41 = vsel %vm1120_vm1, %v1499_v13, %v4841_v6 }
 0x24c   :  { %v3575_v63 = vpop.permute.xlu1 %1431  ;;  %v3577_v49 = vpop.permute.xlu0 %1401  ;;  %v1500_v61 = vsel %vm1107_vm0, %v1487_v12, %v4837_v54  ;;  %v1051_v50 = vsel %vm4674_vm11, %v1038_v44, %v4840_v5  ;;  %v1525_v44 = vsel %vm4675_vm4, %v1512_v41, 1.0 }
 0x24d   :  { %4831 = vst [vmem:[#allocation83_spill] sm:$0xff] %v3575_v63  ;;  %v1524_v63 = vsel %vm4675_vm4, %v1511_v42, 1.0  ;;  %v4842_v42 = vld [vmem:[#allocation99_spill] sm:$0xff]  ;;  %2265 = vmatprep.subr.msk.bf16.mxu0 %vm3581_vm3, %v2263_v11  ;;  %2276 = vmatprep.subr.msk.bf16.mxu1 %vm3581_vm3, %v2263_v11  ;;  %v1552_v41 = vrot.slane %v1525_v44, 5 }
 0x24e   :  { %840 = vrot.lane.b32.xlu1 %v4838_v37, %s2317_s19  ;;  %880 = vrot.lane.b32.xlu0 %v4839_v28, %s2318_s20  ;;  %v1513_v55 = vsel %vm1120_vm1, %v1500_v61, %v4842_v42  ;;  %v1523_v37 = vsel %vm4675_vm4, %v1510_v22, 1.0  ;;  %v1550_v5 = vrot.slane %v1524_v63, 5  ;;  %v4843_v61 = vld [vmem:[#allocation88_spill] sm:$0xff] }
 0x24f   :  { %2268 = vmatpush3.bf16.msk.msra.mxu0 %vm3581_vm3, %v2263_v11  ;;  %2284 = vmatpush3.bf16.msk.msra.mxu1 %vm3581_vm3, %v2263_v11  ;;  %v3620_v13 = vsel %vm4673_vm12, %v1051_v50, %v4843_v61  ;;  %v1526_v28 = vsel %vm4675_vm4, %v1513_v55, 1.0  ;;  %v1549_v22 = vrot.slane %v1523_v37, 5  ;;  %v4845_v42 = vld [vmem:[#allocation100_spill] sm:$0xff]  ;;  %v4846_v37 = vld [vmem:[#allocation31_spill] sm:$0xff]  ;;  %vm1211_vm3 = vcmask 613376  }
 0x250   :  { %v3610_v9 = vpop.permute.xlu1 %1317  ;;  %v3612_v12 = vpop.permute.xlu0 %1427  ;;  %4844 = vst [vmem:[#allocation91_spill] sm:$0xff] %v3620_v13  ;;  %v1462_v38 = vsel %vm1068_vm13, %v3620_v13, %v4845_v42  ;;  %v1554_v55 = vrot.slane %v1526_v28, 5  ;;  %v1553_v28 = vsel %vm566_vm8, %v1550_v5, %v1552_v41  ;;  %v4856_v13 = vld [vmem:[#allocation102_spill] sm:$0xff] }
 0x251   :  { %v1475_v63 = vsel %vm1081_vm14, %v1462_v38, %v3223_v25  ;;  %v1551_v54 = vsel %vm566_vm8, %v1549_v22, %v1550_v5  ;;  %v4854_v25 = vld [vmem:[#allocation98_spill] sm:$0xff] }
 0x252   :  { %999 = vrot.lane.b32.xlu1 %v2746_v46, %s2321_s9  ;;  %763 = vrot.lane.b32.xlu0 %v2677_v10, %s2315_s17  ;;  %v1488_v61 = vsel %vm1094_vm15, %v1475_v63, %v3235_v0  ;;  %v1555_v22 = vsel %vm566_vm8, %v1552_v41, %v1554_v55 }
 0x253   :  { %v1501_v10 = vsel %vm1107_vm0, %v1488_v61, %v3242_v58 }
 0x254   :  { %v3633_v11 = vpop.permute.xlu1 %1259  ;;  %v3635_v50 = vpop.permute.xlu0 %1377  ;;  %v1514_v42 = vsel %vm1120_vm1, %v1501_v10, %v3263_v16  ;;  %v4849_v10 = vld [vmem:[#allocation10_spill] sm:$0xff]  ;;  %v4850_v16 = vld [vmem:[#allocation8_spill] sm:$0xff] }
 0x255   :  { %v1527_v63 = vsel %vm4675_vm4, %v1514_v42, 1.0 }
 0x256   :  { %508 = vrot.lane.b32.xlu1 %v4846_v37, %s2310_s12  ;;  %1574 = vrot.lane.b32.xlu0 %v1551_v54, %s2322_s2  ;;  %v1556_v58 = vrot.slane %v1527_v63, 5 }
 0x258   :  { %v3647_v38 = vpop.permute.xlu1 %1283  ;;  %v3649_v44 = vpop.permute.xlu0 %1403  ;;  %v1557_v42 = vsel %vm566_vm8, %v1554_v55, %v1556_v58 }
 0x259   :  { %4847 = vst [vmem:[#allocation15_spill] sm:$0xff] %v3649_v44 }
 0x25a   :  { %1576 = vrot.lane.b32.xlu1 %v1553_v28, %s2322_s2  ;;  %1578 = vrot.lane.b32.xlu0 %v1555_v22, %s2322_s2  ;;  %v4852_v28 = vld [vmem:[#allocation6_spill] sm:$0xff] }
 0x25b   :  { %v1039_v55 = vsel %vm1029_vm10, %v4852_v28, %v4854_v25 }
 0x25c   :  { %v3656_v61 = vpop.permute.xlu1 %1319  ;;  %v3658_v54 = vpop.permute.xlu0 %1429 }
 0x25d   :  { %4848 = vst [vmem:[#allocation63_spill] sm:$0xff] %v3658_v54  ;;  %v1052_v54 = vsel %vm4674_vm11, %v1039_v55, %v4856_v13 }
 0x25e   :  { %882 = vrot.lane.b32.xlu1 %v4849_v10, %s2318_s20  ;;  %922 = vrot.lane.b32.xlu0 %v4850_v16, %s2319_s21  ;;  %v4853_v16 = vld [vmem:[#allocation11_spill] sm:$0xff] }
 0x260   :  { %v3664_v5 = vpop.permute.xlu1 %1350  ;;  %v3666_v41 = vpop.permute.xlu0 %598 }
 0x261   :  { %4851 = vst [vmem:[#allocation90_spill] sm:$0xff] %v3666_v41  ;;  %v3693_v41 = vsel %vm4673_vm12, %v1052_v54, %v3233_v36 }
 0x262   :  { %1580 = vrot.lane.b32.xlu1 %v1557_v42, %s2322_s2  ;;  %765 = vrot.lane.b32.xlu0 %v4852_v28, %s2315_s17  ;;  %v4855_v42 = vld [vmem:[#allocation28_spill] sm:$0xff]  ;;  %4857 = vst [vmem:[#allocation66_spill] sm:$0xff] %v3693_v41  ;;  %v1463_v25 = vsel %vm1068_vm13, %v3693_v41, %v3253_v56 }
 0x263   :  { %v1476_v13 = vsel %vm1081_vm14, %v1463_v25, %v3251_v24  ;;  %v4862_v25 = vld [vmem:[#allocation104_spill] sm:$0xff] }
 0x264   :  { %v3672_v22 = vpop.permute.xlu1 %657  ;;  %v3674_v63 = vpop.permute.xlu0 %717  ;;  %v1489_v54 = vsel %vm1094_vm15, %v1476_v13, %v3275_v45 }
 0x265   :  { %v1502_v41 = vsel %vm1107_vm0, %v1489_v54, %v3285_v7 }
 0x266   :  { %800 = vrot.lane.b32.xlu1 %v4852_v28, %s2316_s18  ;;  %924 = vrot.lane.b32.xlu0 %v4853_v16, %s2319_s21  ;;  %v4860_v28 = vld [vmem:[#allocation20_spill] sm:$0xff]  ;;  %v1515_v24 = vsel %vm1120_vm1, %v1502_v41, %v3293_v48  ;;  %v4868_v48 = vld [vmem:[#allocation26_spill] sm:$0xff] }
 0x267   :  { %v1528_v7 = vsel %vm4675_vm4, %v1515_v24, 1.0 }
 0x268   :  { %v3680_v10 = vpop.permute.xlu1 %751  ;;  %v499_v0 = vpop.permute.xlu0 %498 }
 0x26a   :  { %962 = vrot.lane.b32.xlu1 %v2746_v46, %s2320_s22  ;;  %392 = vrot.lane.b32.xlu0 %v4855_v42, %s2308_s10  ;;  %v4859_v46 = vld [vmem:[#allocation14_spill] sm:$0xff]  ;;  %v4861_v42 = vld [vmem:[#allocation101_spill] sm:$0xff] }
 0x26b   :  { %v1040_v56 = vsel %vm1029_vm10, %v4859_v46, %v4861_v42 }
 0x26c   :  { %v3695_v16 = vpop.permute.xlu1 %659  ;;  %v3697_v44 = vpop.permute.xlu0 %719 }
 0x26d   :  { %4858 = vst [vmem:[#allocation95_spill] sm:$0xff] %v3695_v16 }
 0x26e   :  { %802 = vrot.lane.b32.xlu1 %v4859_v46, %s2316_s18  ;;  %842 = vrot.lane.b32.xlu0 %v4860_v28, %s2317_s19  ;;  %v1053_v28 = vsel %vm4674_vm11, %v1040_v56, %v4862_v25  ;;  %v4866_v56 = vld [vmem:[#allocation42_spill] sm:$0xff] }
 0x26f   :  { %v3729_v13 = vsel %vm4673_vm12, %v1053_v28, %v3240_v18  ;;  %v1558_v28 = vrot.slane %v1528_v7, 5 }
 0x270   :  { %v3708_v55 = vpop.permute.xlu1 %753  ;;  %v3710_v36 = vpop.permute.xlu0 %788  ;;  %4863 = vst [vmem:[#allocation69_spill] sm:$0xff] %v3729_v13  ;;  %v1464_v54 = vsel %vm1068_vm13, %v3729_v13, %v3301_v33  ;;  %v4869_v33 = vld [vmem:[#allocation27_spill] sm:$0xff] }
 0x271   :  { %v1477_v41 = vsel %vm1081_vm14, %v1464_v54, %v3277_v3  ;;  %v1559_v54 = vsel %vm566_vm8, %v1556_v58, %v1558_v28  ;;  %v4870_v3 = vld [vmem:[#allocation118_spill] sm:$0xff] }
 0x272   :  { %964 = vrot.lane.b32.xlu1 %v4825_v59, %s2320_s22  ;;  %1001 = vrot.lane.b32.xlu0 %v4825_v59, %s2321_s9  ;;  %v4865_v59 = vld [vmem:[#allocation35_spill] sm:$0xff]  ;;  %v1490_v24 = vsel %vm1094_vm15, %v1477_v41, %v3295_v47  ;;  %v4872_v47 = vld [vmem:[#allocation40_spill] sm:$0xff] }
 0x274   :  { %v3731_v42 = vpop.permute.xlu1 %500  ;;  %v538_v45 = vpop.permute.xlu0 %537 }
 0x275   :  { %4864 = vst [vmem:[#allocation82_spill] sm:$0xff] %v3731_v42  ;;  %v1503_v42 = vsel %vm1107_vm0, %v1490_v24, %v4870_v3  ;;  %v4874_v3 = vld [vmem:[#allocation61_spill] sm:$0xff] }
 0x276   :  { %452 = vrot.lane.b32.xlu1 %v4865_v59, %s2309_s11  ;;  %510 = vrot.lane.b32.xlu0 %v4866_v56, %s2310_s12  ;;  %v1516_v7 = vsel %vm1120_vm1, %v1503_v42, %v3328_v15 }
 0x277   :  { %v1529_v41 = vsel %vm4675_vm4, %v1516_v7, 1.0  ;;  %v4876_v7 = vld [vmem:[#allocation23_spill] sm:$0xff] }
 0x278   :  { %v3743_v18 = vpop.permute.xlu1 %721  ;;  %v3745_v25 = vpop.permute.xlu0 %755  ;;  %v1560_v42 = vrot.slane %v1529_v41, 5  ;;  %v4878_v41 = vld [vmem:[#allocation109_spill] sm:$0xff] }
 0x279   :  { %4867 = vst [vmem:[#allocation7_spill] sm:$0xff] %v3743_v18 }
 0x27a   :  { %844 = vrot.lane.b32.xlu1 %v4868_v48, %s2317_s19  ;;  %884 = vrot.lane.b32.xlu0 %v4869_v33, %s2318_s20 }
 0x27c   :  { %v3753_v59 = vpop.permute.xlu1 %790  ;;  %v3755_v13 = vpop.permute.xlu0 %830 }
 0x27e   :  { %1003 = vrot.lane.b32.xlu1 %v4846_v37, %s2321_s9  ;;  %1582 = vrot.lane.b32.xlu0 %v1559_v54, %s2322_s2  ;;  %v1060_v54 = vsel %vm4673_vm12, %v3490_v29, %v4874_v3  ;;  %v1561_v3 = vsel %vm566_vm8, %v1558_v28, %v1560_v42 }
 0x27f   :  { %v1073_v15 = vsel %vm1068_vm13, %v1060_v54, %v499_v0  ;;  %v4877_v0 = vld [vmem:[#allocation47_spill] sm:$0xff] }
 0x280   :  { %v601_v48 = vpop.permute.xlu1 %600  ;;  %v3765_v33 = vpop.permute.xlu0 %757 }
 0x281   :  { %4871 = vst [vmem:[#allocation9_spill] sm:$0xff] %v3765_v33  ;;  %v4875_v33 = vld [vmem:[#allocation32_spill] sm:$0xff] }
 0x282   :  { %512 = vrot.lane.b32.xlu1 %v4872_v47, %s2310_s12  ;;  %767 = vrot.lane.b32.xlu0 %v4859_v46, %s2315_s17  ;;  %v1086_v47 = vsel %vm1081_vm14, %v1073_v15, %v538_v45  ;;  %v4879_v45 = vld [vmem:[#allocation12_spill] sm:$0xff] }
 0x283   :  { %v1099_v46 = vsel %vm1094_vm15, %v1086_v47, %v601_v48  ;;  %v1439_v15 = vsel %vm1029_vm10, %v4879_v45, %v4878_v41  ;;  %v4881_v47 = vld [vmem:[#allocation120_spill] sm:$0xff] }
 0x284   :  { %v3772_v58 = vpop.permute.xlu1 %792  ;;  %v3774_v24 = vpop.permute.xlu0 %832 }
 0x285   :  { %4873 = vst [vmem:[#allocation87_spill] sm:$0xff] %v3774_v24 }
 0x286   :  { %886 = vrot.lane.b32.xlu1 %v4875_v33, %s2318_s20  ;;  %926 = vrot.lane.b32.xlu0 %v4876_v7, %s2319_s21 }
 0x288   :  { %v3786_v18 = vpop.permute.xlu1 %872  ;;  %v662_v16 = vpop.permute.xlu0 %661 }
 0x289   :  { %v1112_v24 = vsel %vm1107_vm0, %v1099_v46, %v662_v16  ;;  %v4880_v16 = vld [vmem:[#allocation117_spill] sm:$0xff] }
 0x28a   :  { %1584 = vrot.lane.b32.xlu1 %v1561_v3, %s2322_s2  ;;  %551 = vrot.lane.b32.xlu0 %v4877_v0, %s2311_s13  ;;  %v1445_v28 = vsel %vm4674_vm11, %v1439_v15, %v4880_v16  ;;  %v4882_v0 = vld [vmem:[#allocation39_spill] sm:$0xff] }
 0x28b   :  { %v1452_v48 = vsel %vm4673_vm12, %v1445_v28, %v3318_v31  ;;  %v4883_v28 = vld [vmem:[#allocation113_spill] sm:$0xff] }
 0x28c   :  { %v3793_v29 = vpop.permute.xlu1 %794  ;;  %v3795_v33 = vpop.permute.xlu0 %834  ;;  %v1465_v46 = vsel %vm1068_vm13, %v1452_v48, %v4881_v47  ;;  %v4886_v47 = vld [vmem:[#allocation116_spill] sm:$0xff] }
 0x28d   :  { %v1478_v3 = vsel %vm1081_vm14, %v1465_v46, %v3335_v32 }
 0x28e   :  { %769 = vrot.lane.b32.xlu1 %v4879_v45, %s2315_s17  ;;  %804 = vrot.lane.b32.xlu0 %v4879_v45, %s2316_s18  ;;  %v1491_v31 = vsel %vm1094_vm15, %v1478_v3, %v3337_v23  ;;  %v4884_v45 = vld [vmem:[#allocation38_spill] sm:$0xff] }
 0x28f   :  { %v1440_v48 = vsel %vm1029_vm10, %v4884_v45, %v4883_v28  ;;  %v1504_v32 = vsel %vm1107_vm0, %v1491_v31, %v3343_v20 }
 0x290   :  { %v3808_v54 = vpop.permute.xlu1 %874  ;;  %v3810_v7 = vpop.permute.xlu0 %914  ;;  %v1446_v46 = vsel %vm4674_vm11, %v1440_v48, %v4886_v47  ;;  %v1517_v3 = vsel %vm1120_vm1, %v1504_v32, %v3352_v35  ;;  %v4899_v35 = vld [vmem:[#allocation19_spill] sm:$0xff] }
 0x291   :  { %v1530_v20 = vsel %vm4675_vm4, %v1517_v3, 1.0  ;;  %v4888_v3 = vld [vmem:[#allocation52_spill] sm:$0xff] }
 0x292   :  { %928 = vrot.lane.b32.xlu1 %v4882_v0, %s2319_s21  ;;  %966 = vrot.lane.b32.xlu0 %v4846_v37, %s2320_s22  ;;  %v4885_v37 = vld [vmem:[#allocation46_spill] sm:$0xff]  ;;  %v1562_v47 = vrot.slane %v1530_v20, 5 }
 0x294   :  { %v3820_v41 = vpop.permute.xlu1 %502  ;;  %v724_v15 = vpop.permute.xlu0 %723 }
 0x295   :  { %v1125_v16 = vsel %vm1120_vm1, %v1112_v24, %v724_v15  ;;  %v4887_v24 = vld [vmem:[#allocation119_spill] sm:$0xff] }
 0x296   :  { %806 = vrot.lane.b32.xlu1 %v4884_v45, %s2316_s18  ;;  %846 = vrot.lane.b32.xlu0 %v4885_v37, %s2317_s19  ;;  %v1453_v0 = vsel %vm4673_vm12, %v1446_v46, %v4887_v24  ;;  %v4889_v24 = vld [vmem:[#allocation60_spill] sm:$0xff] }
 0x297   :  { %v1466_v31 = vsel %vm1068_vm13, %v1453_v0, %v3360_v39 }
 0x298   :  { %v3840_v15 = vpop.permute.xlu1 %836  ;;  %v3842_v28 = vpop.permute.xlu0 %876  ;;  %v1479_v48 = vsel %vm1081_vm14, %v1466_v31, %v3362_v30 }
 0x299   :  { %v1492_v46 = vsel %vm1094_vm15, %v1479_v48, %v3379_v52  ;;  %v1563_v52 = vsel %vm566_vm8, %v1560_v42, %v1562_v47 }
 0x29a   :  { %968 = vrot.lane.b32.xlu1 %v4866_v56, %s2320_s22  ;;  %1005 = vrot.lane.b32.xlu0 %v4866_v56, %s2321_s9  ;;  %v1505_v39 = vsel %vm1107_vm0, %v1492_v46, %v3395_v2  ;;  %v4891_v2 = vld [vmem:[#allocation49_spill] sm:$0xff] }
 0x29b   :  { %v1518_v30 = vsel %vm1120_vm1, %v1505_v39, %v3407_v43 }
 0x29c   :  { %v3853_v32 = vpop.permute.xlu1 %916  ;;  %v3855_v37 = vpop.permute.xlu0 %954  ;;  %v3874_v31 = vsel %vm4675_vm4, %v1518_v30, 1.0  ;;  %v4895_v30 = vld [vmem:[#allocation25_spill] sm:$0xff] }
 0x29d   :  { %v4672_v43 = vrot.slane %v3874_v31, 5 }
 0x29e   :  { %848 = vrot.lane.b32.xlu1 %v4888_v3, %s2317_s19  ;;  %888 = vrot.lane.b32.xlu0 %v4889_v24, %s2318_s20  ;;  %v4894_v24 = vld [vmem:[#allocation56_spill] sm:$0xff] }
 0x29f   :  { %v1565_v3 = vsel %vm566_vm8, %v1562_v47, %v4672_v43  ;;  %v4901_v43 = vld [vmem:[#allocation43_spill] sm:$0xff] }
 0x2a0   :  { %v3867_v56 = vpop.permute.xlu1 %504  ;;  %v760_v0 = vpop.permute.xlu0 %759 }
 0x2a1   :  { %v3870_v20 = vsel %vm4675_vm4, %v1125_v16, %v760_v0  ;;  %v4893_v16 = vld [vmem:[#allocation57_spill] sm:$0xff]  ;;  %v4896_v0 = vld [vmem:[#allocation2_spill] sm:$0xff] }
 0x2a2   :  { %4890 = vst [vmem:[#allocation94_spill] sm:$0xff] %v3870_v20  ;;  %1007 = vrot.lane.b32.xlu1 %v4891_v2, %s2321_s9  ;;  %1586 = vrot.lane.b32.xlu0 %v1563_v52, %s2322_s2  ;;  %v4900_v20 = vld [vmem:[#allocation64_spill] sm:$0xff] }
 0x2a3   :  { %v1442_v47 = vsel %vm1029_vm10, %v4900_v20, %v3354_v17  ;;  %v4903_v17 = vld [vmem:[#allocation22_spill] sm:$0xff] }
 0x2a4   :  { %v3879_v48 = vpop.permute.xlu1 %878  ;;  %v3881_v46 = vpop.permute.xlu0 %918 }
 0x2a5   :  { %4892 = vst [vmem:[#allocation88_spill] sm:$0xff] %v3879_v48 }
 0x2a6   :  { %771 = vrot.lane.b32.xlu1 %v4884_v45, %s2315_s17  ;;  %890 = vrot.lane.b32.xlu0 %v4893_v16, %s2318_s20  ;;  %v1031_v45 = vsel %vm1029_vm10, %v4896_v0, %v4895_v30 }
 0x2a7   :  { %v1044_v23 = vsel %vm4674_vm11, %v1031_v45, %v4899_v35 }
 0x2a8   :  { %v3888_v42 = vpop.permute.xlu1 %956  ;;  %v3890_v39 = vpop.permute.xlu0 %993 }
 0x2aa   :  { %930 = vrot.lane.b32.xlu1 %v4894_v24, %s2319_s21  ;;  %1588 = vrot.lane.b32.xlu0 %v1565_v3, %s2322_s2  ;;  %v1448_v3 = vsel %vm4674_vm11, %v1442_v47, %v3370_v57  ;;  %v4902_v24 = vld [vmem:[#allocation124_spill] sm:$0xff]  ;;  %v4904_v47 = vld [vmem:[#allocation126_spill] sm:$0xff] }
 0x2ab   :  { %v1441_v30 = vsel %vm1029_vm10, %v4901_v43, %v4902_v24  ;;  %v1455_v35 = vsel %vm4673_vm12, %v1448_v3, %v3387_v40  ;;  %v4906_v40 = vld [vmem:[#allocation127_spill] sm:$0xff]  ;;  %v4907_v24 = vld [vmem:[#allocation13_spill] sm:$0xff] }
 0x2ac   :  { %v3901_v52 = vpop.permute.xlu1 %761  ;;  %v3903_v16 = vpop.permute.xlu0 %796  ;;  %v1468_v57 = vsel %vm1068_vm13, %v1455_v35, %v3610_v9  ;;  %v4910_v9 = vld [vmem:[#allocation128_spill] sm:$0xff] }
 0x2ad   :  { %4897 = vst [vmem:[#allocation100_spill] sm:$0xff] %v3901_v52  ;;  %4898 = vst [vmem:[#allocation31_spill] sm:$0xff] %v3903_v16  ;;  %v1057_v52 = vsel %vm4673_vm12, %v1044_v23, %v4903_v17  ;;  %v1447_v16 = vsel %vm4674_vm11, %v1441_v30, %v3368_v34  ;;  %v4908_v23 = vld [vmem:[#allocation3_spill] sm:$0xff]  ;;  %v4909_v34 = vld [vmem:[#allocation24_spill] sm:$0xff] }
 0x2ae   :  { %773 = vrot.lane.b32.xlu1 %v4901_v43, %s2315_s17  ;;  %808 = vrot.lane.b32.xlu0 %v4901_v43, %s2316_s18  ;;  %v1454_v48 = vsel %vm4673_vm12, %v1447_v16, %v4904_v47  ;;  %v4905_v43 = vld [vmem:[#allocation62_spill] sm:$0xff]  ;;  %v1030_v17 = vsel %vm1029_vm10, %v4908_v23, %v4907_v24  ;;  %v1070_v30 = vsel %vm1068_vm13, %v1057_v52, %v4909_v34  ;;  %v4912_v24 = vld [vmem:[#allocation17_spill] sm:$0xff] }
 0x2af   :  { %v1467_v3 = vsel %vm1068_vm13, %v1454_v48, %v4906_v40  ;;  %v1481_v16 = vsel %vm1081_vm14, %v1468_v57, %v3508_v53  ;;  %v4913_v23 = vld [vmem:[#allocation5_spill] sm:$0xff]  ;;  %v4914_v34 = vld [vmem:[#allocation18_spill] sm:$0xff] }
 0x2b0   :  { %v3921_v0 = vpop.permute.xlu1 %920  ;;  %v3923_v45 = vpop.permute.xlu0 %958  ;;  %v1480_v35 = vsel %vm1081_vm14, %v1467_v3, %v4910_v9  ;;  %v1032_v52 = vsel %vm1029_vm10, %v4913_v23, %v4912_v24  ;;  %v4915_v57 = vld [vmem:[#allocation70_spill] sm:$0xff]  ;;  %v4918_v24 = vld [vmem:[#allocation21_spill] sm:$0xff] }
 0x2b1   :  { %v1493_v40 = vsel %vm1094_vm15, %v1480_v35, %v3421_v51  ;;  %v4917_v51 = vld [vmem:[#allocation30_spill] sm:$0xff] }
 0x2b2   :  { %932 = vrot.lane.b32.xlu1 %v4905_v43, %s2319_s21  ;;  %970 = vrot.lane.b32.xlu0 %v4891_v2, %s2320_s22  ;;  %v4911_v2 = vld [vmem:[#allocation16_spill] sm:$0xff]  ;;  %v1506_v53 = vsel %vm1107_vm0, %v1493_v40, %v3435_v26  ;;  %v1045_v35 = vsel %vm4674_vm11, %v1032_v52, %v4917_v51  ;;  %v4919_v40 = vld [vmem:[#allocation33_spill] sm:$0xff]  ;;  %v4920_v23 = vld [vmem:[#allocation34_spill] sm:$0xff] }
 0x2b3   :  { %v1043_v48 = vsel %vm4674_vm11, %v1030_v17, %v4911_v2  ;;  %v4916_v17 = vld [vmem:[#allocation29_spill] sm:$0xff]  ;;  %v1519_v2 = vsel %vm1120_vm1, %v1506_v53, %v3449_v60  ;;  %v4921_v60 = vld [vmem:[#allocation36_spill] sm:$0xff] }
 0x2b4   :  { %v3948_v47 = vpop.permute.xlu1 %995  ;;  %v3950_v43 = vpop.permute.xlu0 %838  ;;  %v1056_v3 = vsel %vm4673_vm12, %v1043_v48, %v4914_v34  ;;  %v1083_v9 = vsel %vm1081_vm14, %v1070_v30, %v4916_v17  ;;  %v1494_v48 = vsel %vm1094_vm15, %v1481_v16, %v3548_v1  ;;  %v1058_v34 = vsel %vm4673_vm12, %v1045_v35, %v4920_v23  ;;  %v4922_v16 = vld [vmem:[#allocation37_spill] sm:$0xff]  ;;  %v4925_v51 = vld [vmem:[#allocation4_spill] sm:$0xff] }
 0x2b5   :  { %v1069_v26 = vsel %vm1068_vm13, %v1056_v3, %v4918_v24  ;;  %v1075_v30 = vsel %vm1068_vm13, %v3525_v27, %v3820_v41  ;;  %v4923_v53 = vld [vmem:[#allocation41_spill] sm:$0xff]  ;;  %v4926_v24 = vld [vmem:[#allocation44_spill] sm:$0xff]  ;;  %v4927_v41 = vld [vmem:[#allocation51_spill] sm:$0xff]  ;;  %v4002_v23 = vsel %vm4675_vm4, %v1519_v2, 1.0 }
 0x2b6   :  { %810 = vrot.lane.b32.xlu1 %v4900_v20, %s2316_s18  ;;  %850 = vrot.lane.b32.xlu0 %v4915_v57, %s2317_s19  ;;  %v1096_v20 = vsel %vm1094_vm15, %v1083_v9, %v4919_v40  ;;  %v1082_v3 = vsel %vm1081_vm14, %v1069_v26, %v4922_v16  ;;  %v1071_v17 = vsel %vm1068_vm13, %v1058_v34, %v4923_v53  ;;  %v4924_v9 = vld [vmem:[#allocation45_spill] sm:$0xff]  ;;  %v4928_v26 = vld [vmem:[#allocation67_spill] sm:$0xff]  ;;  %v4929_v34 = vld [vmem:[#allocation48_spill] sm:$0xff] }
 0x2b7   :  { %v1109_v1 = vsel %vm1107_vm0, %v1096_v20, %v4921_v60  ;;  %v1033_v35 = vsel %vm1029_vm10, %v4925_v51, %v4924_v9  ;;  %v1095_v27 = vsel %vm1094_vm15, %v1082_v3, %v4926_v24  ;;  %v1507_v20 = vsel %vm1107_vm0, %v1494_v48, %v3577_v49  ;;  %v4930_v16 = vld [vmem:[#allocation53_spill] sm:$0xff]  ;;  %v4931_v53 = vld [vmem:[#allocation54_spill] sm:$0xff]  ;;  %v4933_v48 = vld [vmem:[#allocation55_spill] sm:$0xff] }
 0x2b8   :  { %v3984_v52 = vpop.permute.xlu1 %798  ;;  %v3986_v57 = vpop.permute.xlu0 %997  ;;  %v1046_v40 = vsel %vm4674_vm11, %v1033_v35, %v4927_v41  ;;  %v1108_v60 = vsel %vm1107_vm0, %v1095_v27, %v4929_v34  ;;  %v1084_v9 = vsel %vm1081_vm14, %v1071_v17, %v4931_v53  ;;  %v1088_v2 = vsel %vm1081_vm14, %v1075_v30, %v4819_v19  ;;  %v4932_v51 = vld [vmem:[#allocation50_spill] sm:$0xff]  ;;  %v4936_v27 = vld [vmem:[#allocation85_spill] sm:$0xff] }
 0x2b9   :  { %v1059_v3 = vsel %vm4673_vm12, %v1046_v40, %v4930_v16  ;;  %v1121_v49 = vsel %vm1120_vm1, %v1108_v60, %v4932_v51  ;;  %v4934_v24 = vld [vmem:[#allocation58_spill] sm:$0xff]  ;;  %v1566_v30 = vrot.slane %v4002_v23, 5  ;;  %v4937_v17 = vld [vmem:[#allocation65_spill] sm:$0xff]  ;;  %v1101_v51 = vsel %vm1094_vm15, %v1088_v2, %v4828_v8 }
 0x2ba   :  { %972 = vrot.lane.b32.xlu1 %v4928_v26, %s2320_s22  ;;  %1009 = vrot.lane.b32.xlu0 %v4928_v26, %s2321_s9  ;;  %v1072_v35 = vsel %vm1068_vm13, %v1059_v3, %v4933_v48  ;;  %v1097_v41 = vsel %vm1094_vm15, %v1084_v9, %v4934_v24  ;;  %v4935_v26 = vld [vmem:[#allocation130_spill] sm:$0xff]  ;;  %v1443_v60 = vsel %vm1029_vm10, %v4937_v17, %v3480_v21  ;;  %v4939_v23 = vld [vmem:[#allocation77_spill] sm:$0xff]  ;;  %v4940_v48 = vld [vmem:[#allocation59_spill] sm:$0xff]  ;;  %v4942_v24 = vrot.slane %v3874_v31, 5 }
 0x2bb   :  { %v1444_v34 = vsel %vm1029_vm10, %v4936_v27, %v4935_v26  ;;  %v1520_v3 = vsel %vm1120_vm1, %v1507_v20, %v3612_v12  ;;  %v1449_v9 = vsel %vm4674_vm11, %v1443_v60, %v3633_v11  ;;  %v1085_v21 = vsel %vm1081_vm14, %v1072_v35, %v4940_v48  ;;  %v4941_v2 = vld [vmem:[#allocation129_spill] sm:$0xff]  ;;  %v4944_v17 = vld [vmem:[#allocation74_spill] sm:$0xff] }
 0x2bc   :  { %v4027_v40 = vpop.permute.xlu1 %960  ;;  %v4029_v16 = vpop.permute.xlu0 %506  ;;  %v1450_v19 = vsel %vm4674_vm11, %v1444_v34, %v3437_v62  ;;  %v4938_v62 = vld [vmem:[#allocation68_spill] sm:$0xff]  ;;  %v1456_v12 = vsel %vm4673_vm12, %v1449_v9, %v3647_v38  ;;  %v1567_v26 = vsel %vm566_vm8, %v4942_v24, %v1566_v30  ;;  %v1114_v27 = vsel %vm1107_vm0, %v1101_v51, %v4830_v14 }
 0x2bd   :  { %v1457_v53 = vsel %vm4673_vm12, %v1450_v19, %v3451_v4  ;;  %v4054_v4 = vsel %vm4675_vm4, %v1520_v3, 1.0  ;;  %v1469_v8 = vsel %vm1068_vm13, %v1456_v12, %v3656_v61  ;;  %v4943_v61 = vld [vmem:[#allocation132_spill] sm:$0xff]  ;;  %v1134_v19 = vsel %vm4675_vm4, %v1121_v49, %v3680_v10 }
 0x2be   :  { %852 = vrot.lane.b32.xlu1 %v4938_v62, %s2317_s19  ;;  %892 = vrot.lane.b32.xlu0 %v4939_v23, %s2318_s20  ;;  %v1470_v35 = vsel %vm1068_vm13, %v1457_v53, %v4941_v2  ;;  %v1482_v38 = vsel %vm1081_vm14, %v1469_v8, %v3664_v5  ;;  %v4945_v5 = vld [vmem:[#allocation133_spill] sm:$0xff]  ;;  %v1568_v60 = vrot.slane %v4054_v4, 5  ;;  %v1147_v14 = vsel %vm1146_vm2, %v1134_v19, %v3710_v36  ;;  %v4950_v8 = vld [vmem:[#allocation86_spill] sm:$0xff]  ;;  %v4967_v4 = vld [vmem:[#allocation96_spill] sm:$0xff] }
 0x2bf   :  { %v1483_v34 = vsel %vm1081_vm14, %v1470_v35, %v4943_v61  ;;  %vm1610_vm12 = vcmask 654336   ;;  %v1495_v3 = vsel %vm1094_vm15, %v1482_v38, %v3635_v50  ;;  %v1110_v10 = vsel %vm1107_vm0, %v1097_v41, %v3672_v22 }
 0x2c0   :  { %v4058_v11 = vpop.permute.xlu1 %840  ;;  %v4060_v20 = vpop.permute.xlu0 %880  ;;  %v1496_v31 = vsel %vm1094_vm15, %v1483_v34, %v4945_v5  ;;  %v1160_v49 = vsel %vm1159_vm5, %v1147_v14, %v3755_v13  ;;  %v1127_v9 = vsel %vm1120_vm1, %v1114_v27, %v4841_v6  ;;  %v1122_v62 = vsel %vm1120_vm1, %v1109_v1, %v3674_v63  ;;  %v4946_v63 = vld [vmem:[#allocation75_spill] sm:$0xff]  ;;  %v4954_v34 = vld [vmem:[#allocation93_spill] sm:$0xff] }
 0x2c1   :  { %v1123_v36 = vsel %vm1120_vm1, %v1110_v10, %v3697_v44  ;;  %v1173_v50 = vsel %vm1172_vm6, %v1160_v49, %v3786_v18  ;;  %v1135_v13 = vsel %vm4675_vm4, %v1122_v62, %v3708_v55  ;;  %v4947_v44 = vld [vmem:[#allocation73_spill] sm:$0xff]  ;;  %vm1639_vm11 = vcmask 1031168   ;;  %v4948_v18 = vld [vmem:[#allocation15_spill] sm:$0xff] }
 0x2c2   :  { %1011 = vrot.lane.b32.xlu1 %v4944_v17, %s2321_s9  ;;  %1590 = vrot.lane.b32.xlu0 %v1567_v26, %s2322_s2  ;;  %v1136_v41 = vsel %vm4675_vm4, %v1123_v36, %v3745_v25  ;;  %v1186_v6 = vsel %vm1185_vm7, %v1173_v50, %v3810_v7  ;;  %v1508_v1 = vsel %vm1107_vm0, %v1495_v3, %v4948_v18  ;;  %v4949_v7 = vld [vmem:[#allocation87_spill] sm:$0xff]  ;;  %v4951_v26 = vld [vmem:[#allocation90_spill] sm:$0xff]  ;;  %v4959_v50 = vld [vmem:[#allocation9_spill] sm:$0xff] }
 0x2c3   :  { %v1148_v23 = vsel %vm1146_vm2, %v1135_v13, %v3753_v59  ;;  %v1149_v55 = vsel %vm1146_vm2, %v1136_v41, %v3772_v58  ;;  %v1199_v25 = vsel %vm1198_vm9, %v1186_v6, %v3855_v37  ;;  %v1076_v2 = vsel %vm1068_vm13, %v4950_v8, %v3867_v56  ;;  %v4956_v5 = vld [vmem:[#allocation95_spill] sm:$0xff]  ;;  %v4960_v41 = vld [vmem:[#allocation92_spill] sm:$0xff]  ;;  %v4965_v8 = vld [vmem:[#allocation81_spill] sm:$0xff] }
 0x2c4   :  { %v4089_v53 = vpop.permute.xlu1 %999  ;;  %v764_v51 = vpop.permute.xlu0 %763  ;;  %v1161_v48 = vsel %vm1159_vm5, %v1148_v23, %v4949_v7  ;;  %v1162_v12 = vsel %vm1159_vm5, %v1149_v55, %v3795_v33  ;;  %v1212_v35 = vsel %vm1211_vm3, %v1199_v25, %v3890_v39  ;;  %v1569_v33 = vsel %vm566_vm8, %v1566_v30, %v1568_v60  ;;  %v4963_v25 = vld [vmem:[#allocation97_spill] sm:$0xff] }
 0x2c5   :  { %v4100_v22 = vsel %vm4675_vm4, %v1127_v9, %v764_v51  ;;  %v1174_v58 = vsel %vm1172_vm6, %v1161_v48, %v3808_v54  ;;  %v1175_v37 = vsel %vm1172_vm6, %v1162_v12, %v3842_v28  ;;  %v1098_v56 = vsel %vm1094_vm15, %v1085_v21, %v4951_v26  ;;  %v4952_v54 = vld [vmem:[#allocation71_spill] sm:$0xff]  ;;  %v4964_v12 = vld [vmem:[#allocation84_spill] sm:$0xff] }
 0x2c6   :  { %894 = vrot.lane.b32.xlu1 %v4946_v63, %s2318_s20  ;;  %934 = vrot.lane.b32.xlu0 %v4947_v44, %s2319_s21  ;;  %v1187_v39 = vsel %vm1185_vm7, %v1174_v58, %v3853_v32  ;;  %v1188_v27 = vsel %vm1185_vm7, %v1175_v37, %v3881_v46  ;;  %v4953_v28 = vld [vmem:[#allocation63_spill] sm:$0xff]  ;;  %v1089_v30 = vsel %vm1081_vm14, %v1076_v2, %v4954_v34  ;;  %v4955_v46 = vld [vmem:[#allocation89_spill] sm:$0xff] }
 0x2c7   :  { %v1521_v61 = vsel %vm1120_vm1, %v1508_v1, %v4953_v28  ;;  %v1200_v21 = vsel %vm1198_vm9, %v1187_v39, %v3888_v42  ;;  %v1201_v32 = vsel %vm1198_vm9, %v1188_v27, %v3923_v45  ;;  %v1509_v19 = vsel %vm1107_vm0, %v1496_v31, %v4955_v46  ;;  %v4957_v42 = vld [vmem:[#allocation83_spill] sm:$0xff] }
 0x2c8   :  { %v4129_v59 = vpop.permute.xlu1 %508  ;;  %v1575_v38 = vpop.permute.xlu0 %1574  ;;  %v1111_v14 = vsel %vm1107_vm0, %v1098_v56, %v4956_v5  ;;  %v1213_v3 = vsel %vm1211_vm3, %v1200_v21, %v3948_v47  ;;  %v1214_v10 = vsel %vm1211_vm3, %v1201_v32, %v3986_v57  ;;  %v1522_v51 = vsel %vm1120_vm1, %v1509_v19, %v4957_v42  ;;  %v4958_v45 = vld [vmem:[#allocation7_spill] sm:$0xff]  ;;  %v4961_v57 = vld [vmem:[#allocation72_spill] sm:$0xff]  ;;  %v4970_v19 = vld [vmem:[#allocation82_spill] sm:$0xff] }
 0x2c9   :  { %v1611_v24 = vsel %vm1610_vm12, %v1212_v35, %v1575_v38  ;;  %v1124_v62 = vsel %vm1120_vm1, %v1111_v14, %v4958_v45  ;;  %v1102_v47 = vsel %vm1094_vm15, %v1089_v30, %v4960_v41  ;;  %v1534_v6 = vsel %vm4675_vm4, %v1521_v61, 1.0  ;;  %v4966_v58 = vld [vmem:[#allocation99_spill] sm:$0xff]  ;;  %v4968_v30 = vld [vmem:[#allocation12_spill] sm:$0xff]  ;;  %v4975_v42 = vld [vmem:[#allocation78_spill] sm:$0xff] }
 0x2ca   :  { %1592 = vrot.lane.b32.xlu1 %v1569_v33, %s2322_s2  ;;  %936 = vrot.lane.b32.xlu0 %v4952_v54, %s2319_s21  ;;  %v1137_v13 = vsel %vm4675_vm4, %v1124_v62, %v4959_v50  ;;  %v1535_v44 = vsel %vm4675_vm4, %v1522_v51, 1.0  ;;  %v1115_v7 = vsel %vm1107_vm0, %v1102_v47, %v4963_v25  ;;  %v1570_v48 = vrot.slane %v1534_v6, 5  ;;  %v4971_v5 = vld [vmem:[#allocation131_spill] sm:$0xff] }
 0x2cb   :  { %2207 = vmatprep.mubr.msk.f32.mxu0 %vm1639_vm11, %v1611_v24  ;;  %v1150_v63 = vsel %vm1146_vm2, %v1137_v13, %v3793_v29  ;;  %v1572_v2 = vrot.slane %v1535_v44, 5  ;;  %v1128_v37 = vsel %vm1120_vm1, %v1115_v7, %v4966_v58  ;;  %v1074_v14 = vsel %vm1068_vm13, %v4971_v5, %v4970_v19  ;;  %v4976_v13 = vld [vmem:[#allocation76_spill] sm:$0xff] }
 0x2cc   :  { %v1577_v49 = vpop.permute.xlu1 %1576  ;;  %v1579_v9 = vpop.permute.xlu0 %1578  ;;  %v1163_v18 = vsel %vm1159_vm5, %v1150_v63, %v3840_v15  ;;  %v1571_v26 = vsel %vm566_vm8, %v1568_v60, %v1570_v48  ;;  %v1041_v60 = vsel %vm1029_vm10, %v4968_v30, %v4967_v4  ;;  %v1087_v51 = vsel %vm1081_vm14, %v1074_v14, %v4975_v42  ;;  %v4979_v7 = vld [vmem:[#allocation100_spill] sm:$0xff] }
 0x2cd   :  { %v1612_v36 = vsel %vm1610_vm12, %v1213_v3, %v1577_v49  ;;  %v1613_v31 = vsel %vm1610_vm12, %v1214_v10, %v1579_v9  ;;  %v1573_v56 = vsel %vm566_vm8, %v1570_v48, %v1572_v2  ;;  %vm4969_vm8 = vcmask 80896   ;;  %v4973_v10 = vld [vmem:[#allocation31_spill] sm:$0xff]  ;;  %v4974_v49 = vld [vmem:[#allocation94_spill] sm:$0xff] }
 0x2ce   :  { %974 = vrot.lane.b32.xlu1 %v4944_v17, %s2320_s22  ;;  %976 = vrot.lane.b32.xlu0 %v4961_v57, %s2320_s22  ;;  %v4962_v17 = vld [vmem:[#allocation88_spill] sm:$0xff]  ;;  %v1151_v9 = vsel %vm1146_vm2, %v4974_v49, %v4973_v10  ;;  %v1100_v41 = vsel %vm1094_vm15, %v1087_v51, %v4976_v13  ;;  %vm4980_vm10 = vcmask 367616  }
 0x2cf   :  { %2208 = vmatmul.mubr.msk.f32.vlgmr.msra.gmra.mrb[18].mxu0 %vm1639_vm11, %v1612_v36  ;;  %2210 = vmatprep.mubr.msk.f32.mxu1 %vm1639_vm11, %v1613_v31  ;;  %v1176_v55 = vsel %vm1172_vm6, %v1163_v18, %v4962_v17  ;;  %v1164_v45 = vsel %vm1159_vm5, %v1151_v9, %v3950_v43  ;;  %v4977_v18 = vld [vmem:[#allocation80_spill] sm:$0xff] }
 0x2d0   :  { %v883_v1 = vpop.permute.xlu1 %882  ;;  %v923_v23 = vpop.permute.xlu0 %922  ;;  %v1189_v29 = vsel %vm1185_vm7, %v1176_v55, %v3921_v0  ;;  %v1177_v31 = vsel %vm1172_vm6, %v1164_v45, %v4060_v20  ;;  %v1113_v43 = vsel %vm1107_vm0, %v1100_v41, %v4977_v18  ;;  %v4982_v41 = vld [vmem:[#allocation103_spill] sm:$0xff] }
 0x2d1   :  { %v1202_v15 = vsel %vm1198_vm9, %v1189_v29, %v4027_v40  ;;  %v1190_v50 = vsel %vm1185_vm7, %v1177_v31, %v923_v23  ;;  %v4978_v23 = vld [vmem:[#allocation79_spill] sm:$0xff] }
 0x2d2   :  { %1013 = vrot.lane.b32.xlu1 %v4964_v12, %s2321_s9  ;;  %1015 = vrot.lane.b32.xlu0 %v4965_v8, %s2321_s9  ;;  %v1215_v35 = vsel %vm1211_vm3, %v1202_v15, %v4089_v53  ;;  %v1126_v55 = vsel %vm1120_vm1, %v1113_v43, %v4978_v23 }
 0x2d3   :  { %v1139_v48 = vsel %vm4980_vm10, %v1126_v55, %v4979_v7  ;;  %v4985_v55 = vld [vmem:[#allocation106_spill] sm:$0xff]  ;;  %v4986_v7 = vld [vmem:[#allocation107_spill] sm:$0xff] }
 0x2d4   :  { %v1581_v38 = vpop.permute.xlu1 %1580  ;;  %v766_v24 = vpop.permute.xlu0 %765  ;;  %v1152_v29 = vsel %vm1146_vm2, %v1139_v48, %v3984_v52 }
 0x2d5   :  { %v1614_v0 = vsel %vm1610_vm12, %v1215_v35, %v1581_v38  ;;  %v4205_v33 = vsel %vm4675_vm4, %v1128_v37, %v766_v24  ;;  %vm4972_vm4 = vcmask 121856   ;;  %v1165_v12 = vsel %vm1159_vm5, %v1152_v29, %v4058_v11 }
 0x2d6   :  { %1594 = vrot.lane.b32.xlu1 %v1571_v26, %s2322_s2  ;;  %1596 = vrot.lane.b32.xlu0 %v1573_v56, %s2322_s2  ;;  %v1178_v15 = vsel %vm1172_vm6, %v1165_v12, %v883_v1  ;;  %v4987_v12 = vld [vmem:[#allocation108_spill] sm:$0xff] }
 0x2d7   :  { %2211 = vmatmul.mubr.msk.f32.vlgmr.msra.gmra.mrb[0].mxu1 %vm1639_vm11, %v1614_v0 }
 0x2d8   :  { %v801_v40 = vpop.permute.xlu1 %800  ;;  %v925_v53 = vpop.permute.xlu0 %924 }
 0x2d9   :  { %v1191_v35 = vsel %vm1185_vm7, %v1178_v15, %v925_v53  ;;  %v4989_v15 = vld [vmem:[#allocation110_spill] sm:$0xff] }
 0x2dc   :  { %v963_v39 = vpop.permute.xlu1 %962  ;;  %v393_v27 = vpop.permute.xlu0 %392 }
 0x2dd   :  { %v1054_v21 = vsel %vm4969_vm8, %v1041_v60, %v393_v27  ;;  %v1203_v47 = vsel %vm1198_vm9, %v1190_v50, %v963_v39 }
 0x2e0   :  { %v4214_v54 = vpop.permute.xlu1 %802  ;;  %v843_v28 = vpop.permute.xlu0 %842 }
 0x2e4   :  { %v965_v61 = vpop.permute.xlu1 %964  ;;  %v1002_v34 = vpop.permute.xlu0 %1001 }
 0x2e5   :  { %v1216_v57 = vsel %vm1211_vm3, %v1203_v47, %v1002_v34  ;;  %v1204_v38 = vsel %vm1198_vm9, %v1191_v35, %v965_v61  ;;  %v1153_v34 = vsel %vm1146_vm2, %v4100_v22, %v801_v40  ;;  %v1154_v22 = vsel %vm1146_vm2, %v4205_v33, %v4214_v54 }
 0x2e6   :  { %v1166_v4 = vsel %vm1159_vm5, %v1153_v34, %v843_v28 }
 0x2e8   :  { %v453_v32 = vpop.permute.xlu1 %452  ;;  %v4220_v46 = vpop.permute.xlu0 %510 }
 0x2e9   :  { %v1067_v3 = vsel %vm4972_vm4, %v1054_v21, %v453_v32  ;;  %vm4988_vm4 = vmmov %vm4980_vm10 }
 0x2ea   :  { %vm4993_vm8 = vmmov %vm4988_vm4 }
 0x2ec   :  { %v845_v62 = vpop.permute.xlu1 %844  ;;  %v885_v36 = vpop.permute.xlu0 %884 }
 0x2ed   :  { %v1179_v21 = vsel %vm1172_vm6, %v1166_v4, %v885_v36  ;;  %v1167_v40 = vsel %vm1159_vm5, %v1154_v22, %v845_v62  ;;  %v4981_v62 = vld [vmem:[#allocation91_spill] sm:$0xff]  ;;  %v4991_v4 = vld [vmem:[#allocation69_spill] sm:$0xff] }
 0x2ee   :  { %v1077_v13 = vsel %vm1068_vm13, %v4981_v62, %v4029_v16  ;;  %v4998_v62 = vld [vmem:[#allocation123_spill] sm:$0xff] }
 0x2ef   :  { %v1090_v47 = vsel %vm1081_vm14, %v1077_v13, %v4982_v41 }
 0x2f0   :  { %v1004_v6 = vpop.permute.xlu1 %1003  ;;  %v1583_v63 = vpop.permute.xlu0 %1582 }
 0x2f1   :  { %v1615_v44 = vsel %vm1610_vm12, %v1216_v57, %v1583_v63  ;;  %v1217_v58 = vsel %vm1211_vm3, %v1204_v38, %v1004_v6  ;;  %v4983_v63 = vld [vmem:[#allocation105_spill] sm:$0xff] }
 0x2f2   :  { %2213 = vmatprep.mubr.msk.f32.mxu1 %vm1639_vm11, %v1615_v44  ;;  %v1103_v44 = vsel %vm1094_vm15, %v1090_v47, %v4983_v63 }
 0x2f4   :  { %v513_v17 = vpop.permute.xlu1 %512  ;;  %v4244_v20 = vpop.permute.xlu0 %767 }
 0x2f5   :  { %v1080_v25 = vsel %vm1068_vm13, %v1067_v3, %v513_v17  ;;  %v4984_v17 = vld [vmem:[#allocation66_spill] sm:$0xff] }
 0x2f6   :  { %v1078_v23 = vsel %vm1068_vm13, %v4984_v17, %v4129_v59 }
 0x2f7   :  { %v1091_v16 = vsel %vm1081_vm14, %v1078_v23, %v4986_v7 }
 0x2f8   :  { %v887_v8 = vpop.permute.xlu1 %886  ;;  %v927_v2 = vpop.permute.xlu0 %926  ;;  %v1104_v35 = vsel %vm1094_vm15, %v1091_v16, %v4989_v15 }
 0x2f9   :  { %v1192_v32 = vsel %vm1185_vm7, %v1179_v21, %v927_v2  ;;  %v1180_v9 = vsel %vm1172_vm6, %v1167_v40, %v887_v8 }
 0x2fc   :  { %v1585_v37 = vpop.permute.xlu1 %1584  ;;  %v552_v24 = vpop.permute.xlu0 %551 }
 0x2fd   :  { %v1616_v0 = vsel %vm1610_vm12, %v1217_v58, %v1585_v37  ;;  %v4261_v26 = vsel %vm1081_vm14, %v1080_v25, %v552_v24  ;;  %v1116_v25 = vsel %vm1107_vm0, %v1103_v44, %v4985_v55 }
 0x2fe   :  { %2214 = vmatmul.mubr.msk.f32.gmra.mrb[2].mxu1 %vm1639_vm11, %v1616_v0  ;;  %v1129_v8 = vsel %vm1120_vm1, %v1116_v25, %v4987_v12  ;;  %v4990_v0 = vld [vmem:[#allocation112_spill] sm:$0xff] }
 0x2ff   :  { %v1142_v2 = vsel %vm4988_vm4, %v1129_v8, %v4244_v20 }
 0x300   :  { %v4264_v52 = vpop.permute.xlu1 %769  ;;  %v805_v11 = vpop.permute.xlu0 %804 }
 0x301   :  { %v1155_v38 = vsel %vm1146_vm2, %v1142_v2, %v805_v11  ;;  %v1079_v11 = vsel %vm1068_vm13, %v4991_v4, %v4220_v46  ;;  %vm5001_vm13 = vmmov %vm4988_vm4 }
 0x304   :  { %v929_v56 = vpop.permute.xlu1 %928  ;;  %v967_v1 = vpop.permute.xlu0 %966 }
 0x305   :  { %v1205_v19 = vsel %vm1198_vm9, %v1192_v32, %v967_v1  ;;  %v1193_v42 = vsel %vm1185_vm7, %v1180_v9, %v929_v56  ;;  %v1117_v56 = vsel %vm1107_vm0, %v1104_v35, %v4990_v0  ;;  %v4995_v9 = vld [vmem:[#allocation115_spill] sm:$0xff] }
 0x306   :  { %v1853_v0 = vld [vmem:[%s4568_s3 + $0x128] sm:$0xff] }
 0x308   :  { %v807_v39 = vpop.permute.xlu1 %806  ;;  %v847_v53 = vpop.permute.xlu0 %846 }
 0x309   :  { %v1168_v59 = vsel %vm1159_vm5, %v1155_v38, %v847_v53  ;;  %v4992_v53 = vld [vmem:[#allocation114_spill] sm:$0xff] }
 0x30a   :  { %v1130_v21 = vsel %vm1120_vm1, %v1117_v56, %v4992_v53  ;;  %v1816_v56 = vld [vmem:[%s4568_s3] sm:$0xff] }
 0x30b   :  { %v1143_v32 = vsel %vm4993_vm8, %v1130_v21, %v4264_v52 }
 0x30c   :  { %v969_v27 = vpop.permute.xlu1 %968  ;;  %v1006_v61 = vpop.permute.xlu0 %1005 }
 0x30d   :  { %v1218_v5 = vsel %vm1211_vm3, %v1205_v19, %v1006_v61  ;;  %v1206_v51 = vsel %vm1198_vm9, %v1193_v42, %v969_v27  ;;  %v1156_v19 = vsel %vm1146_vm2, %v1143_v32, %v807_v39 }
 0x310   :  { %v849_v30 = vpop.permute.xlu1 %848  ;;  %v889_v60 = vpop.permute.xlu0 %888 }
 0x311   :  { %v1181_v24 = vsel %vm1172_vm6, %v1168_v59, %v889_v60  ;;  %v1817_v59 = vld [vmem:[%s4568_s3 + $0x8] sm:$0xff] }
 0x314   :  { %v1008_v14 = vpop.permute.xlu1 %1007  ;;  %v1587_v3 = vpop.permute.xlu0 %1586 }
 0x315   :  { %v1617_v10 = vsel %vm1610_vm12, %v1218_v5, %v1587_v3  ;;  %v1219_v45 = vsel %vm1211_vm3, %v1206_v51, %v1008_v14  ;;  %v4994_v5 = vld [vmem:[#allocation111_spill] sm:$0xff]  ;;  %v1169_v3 = vsel %vm1159_vm5, %v1156_v19, %v849_v30  ;;  %v4996_v51 = vld [vmem:[#allocation122_spill] sm:$0xff] }
 0x316   :  { %2216 = vmatprep.mubr.msk.f32.mxu1 %vm1639_vm11, %v1617_v10  ;;  %v1092_v14 = vsel %vm1081_vm14, %v1079_v11, %v4994_v5  ;;  %v1106_v52 = vsel %vm1094_vm15, %v4261_v26, %v4996_v51 }
 0x317   :  { %v1105_v42 = vsel %vm1094_vm15, %v1092_v14, %v4995_v9  ;;  %v1119_v13 = vsel %vm1107_vm0, %v1106_v52, %v4998_v62  ;;  %vm5002_vm15 = vmmov %vm4988_vm4  ;;  %v1855_v62 = vld [vmem:[%s4568_s3 + $0x138] sm:$0xff] }
 0x318   :  { %v4279_v28 = vpop.permute.xlu1 %771  ;;  %v891_v49 = vpop.permute.xlu0 %890 }
 0x319   :  { %v1182_v46 = vsel %vm1172_vm6, %v1169_v3, %v891_v49 }
 0x31c   :  { %v931_v36 = vpop.permute.xlu1 %930  ;;  %v1589_v31 = vpop.permute.xlu0 %1588 }
 0x31d   :  { %v1618_v50 = vsel %vm1610_vm12, %v1219_v45, %v1589_v31  ;;  %v1194_v1 = vsel %vm1185_vm7, %v1181_v24, %v931_v36  ;;  %v1841_v24 = vld [vmem:[%s4568_s3 + $0xc8] sm:$0xff] }
 0x31e   :  { %2217 = vmatmul.mubr.msk.f32.gmra.mrb[4].mxu1 %vm1639_vm11, %v1618_v50  ;;  %v4997_v50 = vld [vmem:[#allocation118_spill] sm:$0xff] }
 0x31f   :  { %v1118_v49 = vsel %vm1107_vm0, %v1105_v42, %v4997_v50  ;;  %vm2037_vm0 = vcmask 1043459  }
 0x320   :  { %v774_v33 = vpop.permute.xlu1 %773  ;;  %v809_v54 = vpop.permute.xlu0 %808 }
 0x324   :  { %v933_v57 = vpop.permute.xlu1 %932  ;;  %v971_v6 = vpop.permute.xlu0 %970 }
 0x325   :  { %v1207_v27 = vsel %vm1198_vm9, %v1194_v1, %v971_v6  ;;  %v1195_v40 = vsel %vm1185_vm7, %v1182_v46, %v933_v57  ;;  %v4999_v57 = vld [vmem:[#allocation121_spill] sm:$0xff] }
 0x326   :  { %v1131_v26 = vsel %vm1120_vm1, %v1118_v49, %v4999_v57  ;;  %v5000_v6 = vld [vmem:[#allocation125_spill] sm:$0xff]  ;;  %v1830_v57 = vld [vmem:[%s4568_s3 + $0x70] sm:$0xff] }
 0x327   :  { %v1132_v63 = vsel %vm1120_vm1, %v1119_v13, %v5000_v6  ;;  %v1144_v44 = vsel %vm5001_vm13, %v1131_v26, %v4279_v28  ;;  %v1843_v49 = vld [vmem:[%s4568_s3 + $0xd8] sm:$0xff]  ;;  %v1818_v13 = vld [vmem:[%s4568_s3 + $0x10] sm:$0xff]  ;;  %vm2051_vm1 = vcmask 3072  }
 0x328   :  { %v811_v18 = vpop.permute.xlu1 %810  ;;  %v851_v43 = vpop.permute.xlu0 %850  ;;  %v1145_v17 = vsel %vm5002_vm15, %v1132_v63, %v774_v33  ;;  %v1157_v23 = vsel %vm1146_vm2, %v1144_v44, %v809_v54  ;;  %v1842_v26 = vld [vmem:[%s4568_s3 + $0xd0] sm:$0xff] }
 0x329   :  { %v1158_v55 = vsel %vm1146_vm2, %v1145_v17, %v811_v18  ;;  %v1170_v25 = vsel %vm1159_vm5, %v1157_v23, %v851_v43  ;;  %v1854_v6 = vld [vmem:[%s4568_s3 + $0x130] sm:$0xff] }
 0x32c   :  { %v973_v48 = vpop.permute.xlu1 %972  ;;  %v1010_v29 = vpop.permute.xlu0 %1009 }
 0x32d   :  { %v1220_v20 = vsel %vm1211_vm3, %v1207_v27, %v1010_v29  ;;  %v1208_v39 = vsel %vm1198_vm9, %v1195_v40, %v973_v48 }
 0x330   :  { %v853_v58 = vpop.permute.xlu1 %852  ;;  %v893_v37 = vpop.permute.xlu0 %892 }
 0x331   :  { %v1171_v7 = vsel %vm1159_vm5, %v1158_v55, %v853_v58  ;;  %v1183_v29 = vsel %vm1172_vm6, %v1170_v25, %v893_v37  ;;  %v1829_v58 = vld [vmem:[%s4568_s3 + $0x68] sm:$0xff] }
 0x334   :  { %v1012_v61 = vpop.permute.xlu1 %1011  ;;  %v1591_v34 = vpop.permute.xlu0 %1590 }
 0x335   :  { %v1619_v60 = vsel %vm1610_vm12, %v1220_v20, %v1591_v34  ;;  %v1221_v45 = vsel %vm1211_vm3, %v1208_v39, %v1012_v61  ;;  %v1828_v20 = vld [vmem:[%s4568_s3 + $0x60] sm:$0xff] }
 0x336   :  { %2219 = vmatprep.mubr.msk.f32.mxu1 %vm1639_vm11, %v1619_v60  ;;  %v1840_v61 = vld [vmem:[%s4568_s3 + $0xc0] sm:$0xff] }
 0x337   :  { %v1852_v34 = vld [vmem:[%s4568_s3 + $0x120] sm:$0xff] }
 0x338   :  { %v895_v10 = vpop.permute.xlu1 %894  ;;  %v935_v22 = vpop.permute.xlu0 %934 }
 0x339   :  { %v1184_v12 = vsel %vm1172_vm6, %v1171_v7, %v895_v10  ;;  %v1196_v8 = vsel %vm1185_vm7, %v1183_v29, %v935_v22 }
 0x33c   :  { %v1593_v36 = vpop.permute.xlu1 %1592  ;;  %v937_v31 = vpop.permute.xlu0 %936 }
 0x33d   :  { %v1620_v30 = vsel %vm1610_vm12, %v1221_v45, %v1593_v36  ;;  %v1197_v28 = vsel %vm1185_vm7, %v1184_v12, %v937_v31  ;;  %v1819_v31 = vld [vmem:[%s4568_s3 + $0x18] sm:$0xff] }
 0x33e   :  { %2220 = vmatmul.mubr.msk.f32.gmra.mrb[6].mxu1 %vm1639_vm11, %v1620_v30  ;;  %v1831_v30 = vld [vmem:[%s4568_s3 + $0x78] sm:$0xff] }
 0x340   :  { %v975_v41 = vpop.permute.xlu1 %974  ;;  %v977_v47 = vpop.permute.xlu0 %976 }
 0x341   :  { %v1209_v33 = vsel %vm1198_vm9, %v1196_v8, %v975_v41  ;;  %v1210_v54 = vsel %vm1198_vm9, %v1197_v28, %v977_v47 }
 0x344   :  { %v1014_v16 = vpop.permute.xlu1 %1013  ;;  %v1016_v48 = vpop.permute.xlu0 %1015 }
 0x345   :  { %v1222_v18 = vsel %vm1211_vm3, %v1209_v33, %v1014_v16  ;;  %v1223_v43 = vsel %vm1211_vm3, %v1210_v54, %v1016_v48 }
 0x348   :  { %v1595_v2 = vpop.permute.xlu1 %1594  ;;  %v1597_v15 = vpop.permute.xlu0 %1596 }
 0x349   :  { %v1621_v35 = vsel %vm1610_vm12, %v1222_v18, %v1595_v2  ;;  %v1622_v38 = vsel %vm1610_vm12, %v1223_v43, %v1597_v15  ;;  %vm2033_vm12 = vcmask 1041409  }
 0x34a   :  { %2222 = vmatprep.mubr.msk.f32.mxu1 %vm1639_vm11, %v1621_v35 }
 0x34b   :  { %2223 = vmatmul.mubr.msk.f32.gmra.mrb[8].mxu1 %vm1639_vm11, %v1622_v38  ;;  %vm1933_vm11 = vcmask 199680  }
 0x3a2   :  { %v2209_v37 = vpop.f32.mrb[18].mxu0 }
 0x3a3   :  { %v1805_v1 = vmax.f32 %v2209_v37, 0.0  ;;  %v1745_v27 = vpop.f32.mrb[19].mxu0 }
 0x3a4   :  { %v1804_v4 = vmax.f32 %v1745_v27, 0.0  ;;  %v1845_v27 = vld [vmem:[%s4568_s3 + $0xe8] sm:$0xff] }
 0x3a5   :  { %v1865_v11 = vmul.f32 %v1817_v59, %v1805_v1  ;;  %v1877_v53 = vmul.f32 %v1829_v58, %v1805_v1  ;;  %v1889_v21 = vmul.f32 %v1841_v24, %v1805_v1  ;;  %v1901_v60 = vmul.f32 %v1853_v0, %v1805_v1  ;;  %v1821_v0 = vld [vmem:[%s4568_s3 + $0x28] sm:$0xff] }
 0x3a6   :  { %v1864_v32 = vmul.f32 %v1816_v56, %v1804_v4  ;;  %v1876_v19 = vmul.f32 %v1828_v20, %v1804_v4  ;;  %v1888_v5 = vmul.f32 %v1840_v61, %v1804_v4  ;;  %v1900_v14 = vmul.f32 %v1852_v34, %v1804_v4  ;;  %v1833_v56 = vld [vmem:[%s4568_s3 + $0x88] sm:$0xff]  ;;  %v1820_v61 = vld [vmem:[%s4568_s3 + $0x20] sm:$0xff] }
 0x3a7   :  { %v1913_v3 = vsel %vm1081_vm14, %v1865_v11, 0.0  ;;  %v1943_v10 = vsel %vm1081_vm14, %v1877_v53, 0.0  ;;  %v1972_v22 = vsel %vm1081_vm14, %v1889_v21, 0.0  ;;  %v2001_v46 = vsel %vm1081_vm14, %v1901_v60, 0.0  ;;  %v1857_v20 = vld [vmem:[%s4568_s3 + $0x148] sm:$0xff]  ;;  %v1832_v11 = vld [vmem:[%s4568_s3 + $0x80] sm:$0xff] }
 0x3a8   :  { %v1912_v40 = vsel %vm1081_vm14, %v1864_v32, 0.0  ;;  %v1942_v9 = vsel %vm1081_vm14, %v1876_v19, 0.0  ;;  %v1971_v42 = vsel %vm1081_vm14, %v1888_v5, 0.0  ;;  %v2000_v51 = vsel %vm1081_vm14, %v1900_v14, 0.0  ;;  %v1844_v53 = vld [vmem:[%s4568_s3 + $0xe0] sm:$0xff] }
 0x3a9   :  { %v1914_v52 = vadd.f32 %v1913_v3, %v1912_v40  ;;  %v1944_v39 = vadd.f32 %v1943_v10, %v1942_v9  ;;  %v1973_v45 = vadd.f32 %v1972_v22, %v1971_v42  ;;  %v2002_v36 = vadd.f32 %v2001_v46, %v2000_v51  ;;  %v1856_v21 = vld [vmem:[%s4568_s3 + $0x140] sm:$0xff] }
 0x3aa   :  { %v2212_v50 = vpop.f32.mrb[0].mxu1 }
 0x3ab   :  { %v1807_v41 = vmax.f32 %v2212_v50, 0.0  ;;  %v1755_v47 = vpop.f32.mrb[1].mxu1 }
 0x3ac   :  { %v1806_v63 = vmax.f32 %v1755_v47, 0.0 }
 0x3ad   :  { %v1867_v44 = vmul.f32 %v1819_v31, %v1807_v41  ;;  %v1879_v17 = vmul.f32 %v1831_v30, %v1807_v41  ;;  %v1891_v23 = vmul.f32 %v1843_v49, %v1807_v41  ;;  %v1903_v55 = vmul.f32 %v1855_v62, %v1807_v41 }
 0x3ae   :  { %v1866_v25 = vmul.f32 %v1818_v13, %v1806_v63  ;;  %v1878_v7 = vmul.f32 %v1830_v57, %v1806_v63  ;;  %v1890_v16 = vmul.f32 %v1842_v26, %v1806_v63  ;;  %v1902_v48 = vmul.f32 %v1854_v6, %v1806_v63  ;;  %v1823_v57 = vld [vmem:[%s4568_s3 + $0x38] sm:$0xff] }
 0x3af   :  { %v1917_v2 = vsel %vm1081_vm14, %v1867_v44, 0.0  ;;  %v1947_v15 = vsel %vm1081_vm14, %v1879_v17, 0.0  ;;  %v1976_v35 = vsel %vm1081_vm14, %v1891_v23, 0.0  ;;  %v2005_v38 = vsel %vm1081_vm14, %v1903_v55, 0.0  ;;  %v1835_v26 = vld [vmem:[%s4568_s3 + $0x98] sm:$0xff]  ;;  %v1822_v17 = vld [vmem:[%s4568_s3 + $0x30] sm:$0xff] }
 0x3b0   :  { %v1915_v29 = vsel %vm1081_vm14, %v1866_v25, 0.0  ;;  %v1945_v12 = vsel %vm1081_vm14, %v1878_v7, 0.0  ;;  %v1974_v8 = vsel %vm1081_vm14, %v1890_v16, 0.0  ;;  %v2003_v28 = vsel %vm1081_vm14, %v1902_v48, 0.0  ;;  %v1847_v63 = vld [vmem:[%s4568_s3 + $0xf8] sm:$0xff]  ;;  %v1834_v25 = vld [vmem:[%s4568_s3 + $0x90] sm:$0xff] }
 0x3b1   :  { %v1916_v33 = vadd.f32 %v1915_v29, %v1914_v52  ;;  %v1946_v54 = vadd.f32 %v1945_v12, %v1944_v39  ;;  %v1975_v18 = vadd.f32 %v1974_v8, %v1973_v45  ;;  %v2004_v43 = vadd.f32 %v2003_v28, %v2002_v36  ;;  %v1859_v44 = vld [vmem:[%s4568_s3 + $0x158] sm:$0xff]  ;;  %v1846_v7 = vld [vmem:[%s4568_s3 + $0xf0] sm:$0xff] }
 0x3b2   :  { %v1858_v16 = vld [vmem:[%s4568_s3 + $0x150] sm:$0xff] }
 0x3b3   :  { %v1918_v59 = vadd.f32 %v1917_v2, %v1916_v33  ;;  %v1948_v58 = vadd.f32 %v1947_v15, %v1946_v54  ;;  %v1977_v37 = vadd.f32 %v1976_v35, %v1975_v18  ;;  %v2006_v24 = vadd.f32 %v2005_v38, %v2004_v43 }
 0x3d1   :  { %v2215_v1 = vpop.f32.mrb[2].mxu1 }
 0x3d2   :  { %v1809_v34 = vmax.f32 %v2215_v1, 0.0  ;;  %v1765_v4 = vpop.f32.mrb[3].mxu1 }
 0x3d3   :  { %v1808_v60 = vmax.f32 %v1765_v4, 0.0 }
 0x3d4   :  { %v1869_v32 = vmul.f32 %v1821_v0, %v1809_v34  ;;  %v1881_v19 = vmul.f32 %v1833_v56, %v1809_v34  ;;  %v1893_v5 = vmul.f32 %v1845_v27, %v1809_v34  ;;  %v1905_v14 = vmul.f32 %v1857_v20, %v1809_v34 }
 0x3d5   :  { %v1868_v3 = vmul.f32 %v1820_v61, %v1808_v60  ;;  %v1880_v10 = vmul.f32 %v1832_v11, %v1808_v60  ;;  %v1892_v22 = vmul.f32 %v1844_v53, %v1808_v60  ;;  %v1904_v46 = vmul.f32 %v1856_v21, %v1808_v60  ;;  %v1825_v11 = vld [vmem:[%s4568_s3 + $0x48] sm:$0xff] }
 0x3d6   :  { %v1921_v31 = vsel %vm1081_vm14, %v1869_v32, 0.0  ;;  %v1951_v30 = vsel %vm1081_vm14, %v1881_v19, 0.0  ;;  %v1980_v50 = vsel %vm1081_vm14, %v1893_v5, 0.0  ;;  %v2009_v49 = vsel %vm1081_vm14, %v1905_v14, 0.0  ;;  %v1837_v53 = vld [vmem:[%s4568_s3 + $0xa8] sm:$0xff]  ;;  %v1824_v19 = vld [vmem:[%s4568_s3 + $0x40] sm:$0xff] }
 0x3d7   :  { %v1919_v40 = vsel %vm1081_vm14, %v1868_v3, 0.0  ;;  %v1949_v9 = vsel %vm1081_vm14, %v1880_v10, 0.0  ;;  %v1978_v42 = vsel %vm1081_vm14, %v1892_v22, 0.0  ;;  %v2007_v51 = vsel %vm1081_vm14, %v1904_v46, 0.0  ;;  %v1849_v60 = vld [vmem:[%s4568_s3 + $0x108] sm:$0xff]  ;;  %v1836_v3 = vld [vmem:[%s4568_s3 + $0xa0] sm:$0xff] }
 0x3d8   :  { %v1920_v52 = vadd.f32 %v1919_v40, %v1918_v59  ;;  %v1950_v39 = vadd.f32 %v1949_v9, %v1948_v58  ;;  %v1979_v45 = vadd.f32 %v1978_v42, %v1977_v37  ;;  %v2008_v36 = vadd.f32 %v2007_v51, %v2006_v24  ;;  %v1861_v32 = vld [vmem:[%s4568_s3 + $0x168] sm:$0xff]  ;;  %v1848_v10 = vld [vmem:[%s4568_s3 + $0x100] sm:$0xff] }
 0x3d9   :  { %v1860_v22 = vld [vmem:[%s4568_s3 + $0x160] sm:$0xff] }
 0x3da   :  { %v1922_v62 = vadd.f32 %v1921_v31, %v1920_v52  ;;  %v1952_v13 = vadd.f32 %v1951_v30, %v1950_v39  ;;  %v1981_v41 = vadd.f32 %v1980_v50, %v1979_v45  ;;  %v2010_v47 = vadd.f32 %v2009_v49, %v2008_v36 }
 0x3f1   :  { %v2218_v6 = vpop.f32.mrb[4].mxu1 }
 0x3f2   :  { %v1811_v23 = vmax.f32 %v2218_v6, 0.0  ;;  %v1775_v55 = vpop.f32.mrb[5].mxu1 }
 0x3f3   :  { %v1810_v48 = vmax.f32 %v1775_v55, 0.0 }
 0x3f4   :  { %v1871_v29 = vmul.f32 %v1823_v57, %v1811_v23  ;;  %v1883_v12 = vmul.f32 %v1835_v26, %v1811_v23  ;;  %v1895_v8 = vmul.f32 %v1847_v63, %v1811_v23  ;;  %v1907_v28 = vmul.f32 %v1859_v44, %v1811_v23 }
 0x3f5   :  { %v1870_v33 = vmul.f32 %v1822_v17, %v1810_v48  ;;  %v1882_v54 = vmul.f32 %v1834_v25, %v1810_v48  ;;  %v1894_v18 = vmul.f32 %v1846_v7, %v1810_v48  ;;  %v1906_v43 = vmul.f32 %v1858_v16, %v1810_v48  ;;  %v1827_v25 = vld [vmem:[%s4568_s3 + $0x58] sm:$0xf] }
 0x3f6   :  { %v1925_v0 = vsel %vm1081_vm14, %v1871_v29, 0.0  ;;  %v1955_v56 = vsel %vm1081_vm14, %v1883_v12, 0.0  ;;  %v1984_v1 = vsel %vm1081_vm14, %v1895_v8, 0.0  ;;  %v2013_v27 = vsel %vm1081_vm14, %v1907_v28, 0.0  ;;  %v1839_v7 = vld [vmem:[%s4568_s3 + $0xb8] sm:$0xf] }
 0x3f7   :  { %v1923_v2 = vsel %vm1081_vm14, %v1870_v33, 0.0  ;;  %v1953_v15 = vsel %vm1081_vm14, %v1882_v54, 0.0  ;;  %v1982_v35 = vsel %vm1081_vm14, %v1894_v18, 0.0  ;;  %v2011_v38 = vsel %vm1081_vm14, %v1906_v43, 0.0  ;;  %v1851_v48 = vld [vmem:[%s4568_s3 + $0x118] sm:$0xf] }
 0x3f8   :  { %v1924_v59 = vadd.f32 %v1923_v2, %v1922_v62  ;;  %v1954_v58 = vadd.f32 %v1953_v15, %v1952_v13  ;;  %v1983_v37 = vadd.f32 %v1982_v35, %v1981_v41  ;;  %v2012_v24 = vadd.f32 %v2011_v38, %v2010_v47  ;;  %v1863_v29 = vld [vmem:[%s4568_s3 + $0x178] sm:$0xf]  ;;  %v1826_v12 = vld [vmem:[%s4568_s3 + $0x50] sm:$0xff] }
 0x3f9   :  { %v1838_v33 = vld [vmem:[%s4568_s3 + $0xb0] sm:$0xff] }
 0x3fa   :  { %v1926_v20 = vadd.f32 %v1925_v0, %v1924_v59  ;;  %v1956_v61 = vadd.f32 %v1955_v56, %v1954_v58  ;;  %v1985_v34 = vadd.f32 %v1984_v1, %v1983_v37  ;;  %v2014_v4 = vadd.f32 %v2013_v27, %v2012_v24  ;;  %v1850_v54 = vld [vmem:[%s4568_s3 + $0x110] sm:$0xff] }
 0x3fb   :  { %v1862_v18 = vld [vmem:[%s4568_s3 + $0x170] sm:$0xff] }
 0x411   :  { %v2221_v21 = vpop.f32.mrb[6].mxu1 }
 0x412   :  { %v1813_v5 = vmax.f32 %v2221_v21, 0.0  ;;  %v1785_v14 = vpop.f32.mrb[7].mxu1 }
 0x413   :  { %v1812_v46 = vmax.f32 %v1785_v14, 0.0 }
 0x414   :  { %v1873_v40 = vmul.f32 %v1825_v11, %v1813_v5  ;;  %v1885_v9 = vmul.f32 %v1837_v53, %v1813_v5  ;;  %v1897_v42 = vmul.f32 %v1849_v60, %v1813_v5  ;;  %v1909_v51 = vmul.f32 %v1861_v32, %v1813_v5 }
 0x415   :  { %v1872_v52 = vmul.f32 %v1824_v19, %v1812_v46  ;;  %v1884_v39 = vmul.f32 %v1836_v3, %v1812_v46  ;;  %v1896_v45 = vmul.f32 %v1848_v10, %v1812_v46  ;;  %v1908_v36 = vmul.f32 %v1860_v22, %v1812_v46 }
 0x416   :  { %v1929_v57 = vsel %vm1081_vm14, %v1873_v40, 0.0  ;;  %v1959_v26 = vsel %vm1081_vm14, %v1885_v9, 0.0  ;;  %v1988_v6 = vsel %vm1081_vm14, %v1897_v42, 0.0  ;;  %v2017_v63 = vsel %vm1081_vm14, %v1909_v51, 0.0 }
 0x417   :  { %v1927_v31 = vsel %vm1081_vm14, %v1872_v52, 0.0  ;;  %v1957_v30 = vsel %vm1081_vm14, %v1884_v39, 0.0  ;;  %v1986_v50 = vsel %vm1081_vm14, %v1896_v45, 0.0  ;;  %v2015_v49 = vsel %vm1081_vm14, %v1908_v36, 0.0 }
 0x418   :  { %v1928_v62 = vadd.f32 %v1927_v31, %v1926_v20  ;;  %v1958_v13 = vadd.f32 %v1957_v30, %v1956_v61  ;;  %v1987_v41 = vadd.f32 %v1986_v50, %v1985_v34  ;;  %v2016_v47 = vadd.f32 %v2015_v49, %v2014_v4 }
 0x41a   :  { %v1930_v44 = vadd.f32 %v1929_v57, %v1928_v62  ;;  %v1960_v17 = vadd.f32 %v1959_v26, %v1958_v13  ;;  %v1989_v23 = vadd.f32 %v1988_v6, %v1987_v41  ;;  %v2018_v55 = vadd.f32 %v2017_v63, %v2016_v47 }
 0x41e   :  { %v2224_v16 = vpop.f32.mrb[8].mxu1 }
 0x41f   :  { %v1815_v8 = vmax.f32 %v2224_v16, 0.0  ;;  %v1795_v28 = vpop.f32.mrb[9].mxu1 }
 0x420   :  { %v1814_v43 = vmax.f32 %v1795_v28, 0.0 }
 0x421   :  { %v1875_v2 = vmul.f32 %v1827_v25, %v1815_v8  ;;  %v1887_v15 = vmul.f32 %v1839_v7, %v1815_v8  ;;  %v1899_v35 = vmul.f32 %v1851_v48, %v1815_v8  ;;  %v1911_v38 = vmul.f32 %v1863_v29, %v1815_v8  ;;  %v2043_v25 = vld [vmem:[%s4569_s4] sm:$0xf] }
 0x422   :  { %v1874_v59 = vmul.f32 %v1826_v12, %v1814_v43  ;;  %v1886_v58 = vmul.f32 %v1838_v33, %v1814_v43  ;;  %v1898_v37 = vmul.f32 %v1850_v54, %v1814_v43  ;;  %v1910_v24 = vmul.f32 %v1862_v18, %v1814_v43 }
 0x423   :  { %v1934_v11 = vsel %vm1933_vm11, %v1875_v2, 0.0  ;;  %v1963_v53 = vsel %vm1933_vm11, %v1887_v15, 0.0  ;;  %v1992_v21 = vsel %vm1933_vm11, %v1899_v35, 0.0  ;;  %v2021_v60 = vsel %vm1933_vm11, %v1911_v38, 0.0 }
 0x424   :  { %v1931_v0 = vsel %vm1081_vm14, %v1874_v59, 0.0  ;;  %v1961_v56 = vsel %vm1081_vm14, %v1886_v58, 0.0  ;;  %v1990_v1 = vsel %vm1081_vm14, %v1898_v37, 0.0  ;;  %v2019_v27 = vsel %vm1081_vm14, %v1910_v24, 0.0 }
 0x425   :  { %v1932_v20 = vadd.f32 %v1931_v0, %v1930_v44  ;;  %v1962_v61 = vadd.f32 %v1961_v56, %v1960_v17  ;;  %v1991_v34 = vadd.f32 %v1990_v1, %v1989_v23  ;;  %v2020_v4 = vadd.f32 %v2019_v27, %v2018_v55 }
 0x426   :  { %vm2035_vm14 = vcmask 1042434  }
 0x427   :  { %v1935_v32 = vadd.f32 %v1934_v11, %v1932_v20  ;;  %v1964_v19 = vadd.f32 %v1963_v53, %v1962_v61  ;;  %v1993_v5 = vadd.f32 %v1992_v21, %v1991_v34  ;;  %v2022_v14 = vadd.f32 %v2021_v60, %v2020_v4 }
 0x429   :  { %v1936_v3 = vrot.slane %v1935_v32, 4  ;;  %v1965_v10 = vrot.slane %v1964_v19, 4  ;;  %v1994_v22 = vrot.slane %v1993_v5, 4  ;;  %v2023_v46 = vrot.slane %v2022_v14, 4 }
 0x42b   :  { %v1937_v40 = vadd.f32 %v1936_v3, %v1935_v32  ;;  %v1966_v9 = vadd.f32 %v1965_v10, %v1964_v19  ;;  %v1995_v42 = vadd.f32 %v1994_v22, %v1993_v5  ;;  %v2024_v51 = vadd.f32 %v2023_v46, %v2022_v14 }
 0x42d   :  { %v1938_v52 = vrot.slane %v1937_v40, 2  ;;  %v1967_v39 = vrot.slane %v1966_v9, 2  ;;  %v1996_v45 = vrot.slane %v1995_v42, 2  ;;  %v2025_v36 = vrot.slane %v2024_v51, 2 }
 0x42f   :  { %v1939_v31 = vadd.f32 %v1938_v52, %v1937_v40  ;;  %v1968_v30 = vadd.f32 %v1967_v39, %v1966_v9  ;;  %v1997_v50 = vadd.f32 %v1996_v45, %v1995_v42  ;;  %v2026_v49 = vadd.f32 %v2025_v36, %v2024_v51 }
 0x431   :  { %v1940_v62 = vrot.slane %v1939_v31, 1  ;;  %v1969_v13 = vrot.slane %v1968_v30, 1  ;;  %v1998_v41 = vrot.slane %v1997_v50, 1  ;;  %v2027_v47 = vrot.slane %v2026_v49, 1 }
 0x433   :  { %v1941_v57 = vadd.f32 %v1940_v62, %v1939_v31  ;;  %v1970_v26 = vadd.f32 %v1969_v13, %v1968_v30  ;;  %v1999_v6 = vadd.f32 %v1998_v41, %v1997_v50  ;;  %v2028_v63 = vadd.f32 %v2027_v47, %v2026_v49 }
 0x435   :  { %v2034_v44 = vsel %vm2033_vm12, %v1970_v26, %v1941_v57 }
 0x436   :  { %v2036_v17 = vsel %vm2035_vm14, %v1999_v6, %v2034_v44 }
 0x437   :  { %v2038_v23 = vsel %vm2037_vm0, %v2028_v63, %v2036_v17 }
 0x438   :  { %v2040_v55 = vsel %vm1933_vm11, %v2038_v23, 0.0 }
 0x439   :  { %2041 = vadd.xlane.f32.xlu1 %v2040_v55 }
 0x4c6   :  { %v2042_v7 = vpop.xlane.xlu1 %2041 }
 0x4c7   :  { %v2044_v16 = vadd.f32 %v2043_v25, %v2042_v7 }
 0x4c9   :  { %v2089_v48 = vmul.f32 -1.442695, %v2044_v16 }
 0x4cb   :  { %2302 = vpow2.f32 %v2089_v48 }
 0x4d5   :  { %v2303_v29 = vpop.eup %2302 }
 0x4d6   :  { %v2048_v12 = vadd.f32 1.0, %v2303_v29 }
 0x4d8   :  { %2304 = vrcp.f32 %v2048_v12 }
 0x4e2   :  { %v2305_v8 = vpop.eup %2304 }
 0x4e3   :  { %2052 = vst.msk [vmem:[%s4570_s5] sm:$0xf] %vm2051_vm1, %v2305_v8 }

</bundles_post_ra>
